<compile_context>
chip_gen: v5e
topology: v5e:2x2
jax: 0.10.0
libtpu: 0.0.40
codegen_flags: <defaults>
</compile_context>

<pallas_src>
import numpy as np
import jax
import jax.numpy as jnp
from jax.experimental import pallas as pl
from jax.experimental.pallas import tpu as pltpu

_C = 30.0
_ALPHA = 4.2


# ---------------------------------------------------------------------------
# Pallas kernel
# ---------------------------------------------------------------------------
def _make_kernel(bt, C, H, W, fuse_col):
    Hs, Ws = H // 2, W // 2
    is_color = (C == 3)
    f32 = jnp.float32
    bf16 = jnp.bfloat16

    def _mm(a, b):
        # bf16 MXU matmul, f32 accumulation (filters are exact dyadic rationals).
        return jnp.dot(a.astype(bf16), b, preferred_element_type=f32)

    def kernel(*refs):
        x_ref, y_ref = refs[0], refs[1]
        idx = 2
        if fuse_col:
            sw_ref = None
            cf_ref = refs[idx]; idx += 1
        else:
            sw_ref, cf_ref = refs[idx], refs[idx + 1]; idx += 2
        rh_ref = refs[idx]; idx += 1
        if is_color:
            cwm_ref, rhm_ref = refs[idx], refs[idx + 1]; idx += 2
        out_ref = refs[idx]

        # ---- [-1,1] -> [0,255] + RGB->YIQ, per stream (no batch concat) -----
        def to_planes(img_ref):
            v = (img_ref[...].astype(f32) + 1.0) * 127.5          # (bt, C, H, W)
            if is_color:
                r, g, b = v[:, 0], v[:, 1], v[:, 2]
                luma = 0.299 * r + 0.587 * g + 0.114 * b          # (bt, H, W)
                i_c = 0.596 * r - 0.274 * g - 0.322 * b
                q_c = 0.211 * r - 0.523 * g + 0.312 * b
                return luma, (i_c, q_c)
            return v[:, 0], None

        # ---- luma Haar pipeline for one stream -------------------------------
        def luma_coeffs(luma):
            if fuse_col:
                # column subsample folded into the 6-filter bank: one wide matmul
                lw = _mm(luma.reshape(bt * H, W), cf_ref[...])     # (bt*H, 6*Ws)
            else:
                cs = _mm(luma.reshape(bt * H, W), sw_ref[...])     # (bt*H, Ws)
                lw = _mm(cs, cf_ref[...])                          # (bt*H, 6*Ws)
            # cast to bf16 BEFORE the transpose: only consumed by bf16 matmuls.
            lwT = jnp.transpose(lw.reshape(bt, H, 6 * Ws).astype(bf16),
                                (0, 2, 1))                         # (bt, 6*Ws, H)
            coefs = []
            for j in range(6):
                blk = lwT[:, j * Ws:(j + 1) * Ws, :].reshape(bt * Ws, H)
                cj = jnp.dot(blk, rh_ref[j], preferred_element_type=f32)
                coefs.append(jnp.abs(cj.reshape(bt, Ws, Hs)))
            return coefs

        # ---- chroma 2x2-mean magnitude for one plane --------------------------
        def chroma_mag(plane):
            cw = _mm(plane.reshape(bt * H, W), cwm_ref[...])       # (bt*H, Ws)
            cwT = jnp.transpose(cw.reshape(bt, H, Ws).astype(bf16), (0, 2, 1))
            cm = jnp.dot(cwT.reshape(bt * Ws, H), rhm_ref[...],
                         preferred_element_type=f32)               # (bt*Ws, Hs)
            return jnp.abs(cm.reshape(bt, Ws, Hs))

        luma_x, chroma_x = to_planes(x_ref)
        luma_y, chroma_y = to_planes(y_ref)
        cx = luma_coeffs(luma_x)
        cy = luma_coeffs(luma_y)

        def local_sim(a, b):
            return (2.0 * a * b + _C) * pl.reciprocal(a * a + b * b + _C,
                                                      approx=True)

        sims, wts = [], []
        for o in range(2):                                         # Haar orientations
            j0 = 3 * o
            s1 = local_sim(cx[j0], cy[j0])                         # scale 1
            s2 = local_sim(cx[j0 + 1], cy[j0 + 1])                 # scale 2
            sims.append(0.5 * (s1 + s2))                           # (bt, Ws, Hs)
            wts.append(jnp.maximum(cx[j0 + 2], cy[j0 + 2]))        # scale 3

        if is_color:
            mi_x, mq_x = chroma_mag(chroma_x[0]), chroma_mag(chroma_x[1])
            mi_y, mq_y = chroma_mag(chroma_y[0]), chroma_mag(chroma_y[1])
            sims.append(0.5 * (local_sim(mi_x, mi_y) + local_sim(mq_x, mq_y)))
            wts.append(0.5 * (wts[0] + wts[1]))

        # ---- per-image weighted pooling + inverse sigmoid --------------------
        num = jnp.zeros((bt, 1, 1), f32)
        den = jnp.zeros((bt, 1, 1), f32)
        half_alpha = 0.5 * _ALPHA
        for s_, w_ in zip(sims, wts):
            # sigmoid(alpha*s) == 0.5*(1 + tanh(alpha*s/2)) -> single EUP op
            sig = 0.5 * (1.0 + jnp.tanh(half_alpha * s_))
            num = num + jnp.sum(w_ * sig, axis=(1, 2), keepdims=True)
            den = den + jnp.sum(w_, axis=(1, 2), keepdims=True)
        r = num / jnp.maximum(den, 1e-12)                          # guard flat images
        r = jnp.clip(r, 1e-6, 1.0 - 1e-6)
        out_ref[...] = (jnp.log(r / (1.0 - r)) * (1.0 / _ALPHA)) ** 2

    return kernel


# ---------------------------------------------------------------------------
# Deterministic filter-matrix construction (numpy, trace time)
# ---------------------------------------------------------------------------
def _conv1d_same_matrix(n, w):
    """M (n,n) with (M @ v)[m] = sum_i w[i] * v[m - i + off]; scipy 'same', zero padded."""
    k = len(w)
    off = (k - 1) // 2
    M = np.zeros((n, n), np.float64)
    for m in range(n):
        for i in range(k):
            p = m - i + off
            if 0 <= p < n:
                M[m, p] += w[i]
    return M


def _build_filters(H, W, fuse_col):
    Hs, Ws = H // 2, W // 2
    sub = np.array([0.5, 0.5], np.float64)
    DH = _conv1d_same_matrix(H, sub)[0::2, :]        # (Hs, H)  row subsample
    DW = _conv1d_same_matrix(W, sub)[0::2, :]        # (Ws, W)  col subsample

    sgn, box = [], []
    for s in (1, 2, 3):
        k = 2 ** s
        v = np.full(k, 2.0 ** (-s))
        v[:k // 2] *= -1.0
        sgn.append(v)                                 # signed Haar 1-D kernel (carries 2^-s)
        box.append(np.ones(k))                        # box 1-D kernel

    # filter pair j: j=0..2 -> (row sgn_s, col box_s)  [Haar filter h]
    #                j=3..5 -> (row box_s, col sgn_s)  [Haar filter h^T]
    col_kernels = box + sgn
    row_kernels = sgn + box

    SW = DW.T                                                                            # (W, Ws)
    CF6 = np.concatenate([_conv1d_same_matrix(Ws, k).T for k in col_kernels], axis=1)    # (Ws, 6*Ws)
    RH6 = np.stack([(_conv1d_same_matrix(Hs, k) @ DH).T for k in row_kernels], axis=0)   # (6, H, Hs)
    CWM = (_conv1d_same_matrix(Ws, sub) @ DW).T                                          # (W, Ws)
    RHM = (_conv1d_same_matrix(Hs, sub) @ DH).T                                          # (H, Hs)

    def cvt(a):  # every entry is a small dyadic rational -> exactly representable in bf16
        return jnp.asarray(np.asarray(a, np.float32), dtype=jnp.bfloat16)

    if fuse_col:
        col_mats = (cvt(SW @ CF6),)                  # (W, 6*Ws): subsample folded in
    else:
        col_mats = (cvt(SW), cvt(CF6))               # (W, Ws), (Ws, 6*Ws)
    return col_mats, cvt(RH6), cvt(CWM), cvt(RHM)


# ---------------------------------------------------------------------------
# Generation-aware sizing
# ---------------------------------------------------------------------------
def _device_kind():
    try:
        return jax.devices()[0].device_kind.lower()
    except Exception:
        return ""


def _vmem_physical_bytes():
    try:
        return int(pltpu.get_tpu_info().vmem_capacity_bytes)
    except Exception:
        return (64 if "v7" in _device_kind() else 128) * 1024 * 1024


def _default_fuse_col(W):
    # 256-wide MXU (v6e/v7x): fusing the column subsample saves ~25% of the
    # column-phase MXU tiles; on v5e's 128-wide MXU the argument reverses for
    # W >= 256, so keep the split path there.
    if "v5" in _device_kind() and W >= 256:
        return False
    return True


def _pick_block_batch(B, per_img_bytes, vmem_budget_bytes):
    bt = int(max(1, min(B, vmem_budget_bytes // max(per_img_bytes, 1))))
    if B >= 2:
        # always keep >= 2 grid steps: lets BlockSpec double-buffering hide the
        # input DMA and lets v7x shard the "parallel" batch axis over both TCs.
        bt = min(bt, B // 2)
    bt = max(bt, 1)
    while B % bt:
        bt -= 1
    return bt


# ---------------------------------------------------------------------------
# Wrapper (HaarPSILoss.forward)
# ---------------------------------------------------------------------------
def haarpsi_loss(x, y, *, block_batch=None, fuse_col_subsample=None):
    """x, y: (B, C, H, W), C in {1,3}, float in [-1, 1]. Returns 1 - mean_b HaarPSI.

    Inputs are consumed in whatever dtype they arrive in (upcast to f32 inside
    the kernel); feeding bf16 halves the dominant HBM stream on v5e/v6e
    (re-validate fidelity against the reference before relying on it).
    """
    B, C, H, W = x.shape
    assert C in (1, 3) and H % 2 == 0 and W % 2 == 0
    is_color = (C == 3)
    fuse_col = (_default_fuse_col(W) if fuse_col_subsample is None
                else fuse_col_subsample)

    col_mats, RH6, CWM, RHM = _build_filters(H, W, fuse_col)
    consts = list(col_mats) + [RH6] + ([CWM, RHM] if is_color else [])

    # per-image VMEM: 2 inputs x 2 pipeline buffers (f32-equivalent) + generous
    # allowance for the straight-line intermediate live set.
    itemsize = jnp.dtype(x.dtype).itemsize
    per_img = (2 * 2 * C * itemsize + 160) * H * W
    phys = _vmem_physical_bytes()
    bt = (block_batch if block_batch is not None
          else _pick_block_batch(B, per_img, phys // 2))
    assert B % bt == 0

    const_bytes = 2 * sum(int(a.size) * 2 for a in consts)      # bf16, double-buffered
    vmem_limit = int(min(phys * 3 // 4,
                         max(32 << 20, bt * per_img + const_bytes + (8 << 20))))

    img_spec = pl.BlockSpec((bt, C, H, W), lambda g_: (g_, 0, 0, 0))

    def const_spec(arr):
        # TODO(synk): constants could be single-buffered (pl.Buffered(1)) to
        # reclaim VMEM on v7x for very large images; negligible at these sizes.
        zeros = (0,) * arr.ndim
        return pl.BlockSpec(arr.shape, lambda g_: zeros)

    operands = [x, y] + consts
    in_specs = [img_spec, img_spec] + [const_spec(a) for a in consts]

    haarpsi = pl.pallas_call(
        _make_kernel(bt, C, H, W, fuse_col),
        out_shape=jax.ShapeDtypeStruct((B, 1, 1), jnp.float32),
        grid_spec=pltpu.PrefetchScalarGridSpec(
            num_scalar_prefetch=0,
            grid=(B // bt,),
            in_specs=in_specs,
            out_specs=pl.BlockSpec((bt, 1, 1), lambda g_: (g_, 0, 0)),
        ),
        compiler_params=pltpu.CompilerParams(
            dimension_semantics=("parallel",),   # batch chunks are independent
            vmem_limit_bytes=vmem_limit,
        ),
    )(*operands)
    return 1.0 - jnp.mean(haarpsi)


# ---------------------------------------------------------------------------
# NumPy reference (direct 'same' convolutions) for a correctness check
# ---------------------------------------------------------------------------
def _conv2d_same_np(x, h):
    H, W = x.shape
    kh, kw = h.shape
    F = np.zeros((H + kh - 1, W + kw - 1), np.float64)
    for i in range(kh):
        for j in range(kw):
            F[i:i + H, j:j + W] += h[i, j] * x
    oh, ow = (kh - 1) // 2, (kw - 1) // 2
    return F[oh:oh + H, ow:ow + W]


def _haarpsi_ref_np(ref_img, dis_img):
    """ref_img, dis_img: (C, H, W) float64 in [0, 255]. Returns scalar HaarPSI."""
    color = ref_img.shape[0] == 3
    if color:
        def yiq(im):
            r, g, b = im
            return (0.299 * r + 0.587 * g + 0.114 * b,
                    0.596 * r - 0.274 * g - 0.322 * b,
                    0.211 * r - 0.523 * g + 0.312 * b)
        y1, i1, q1 = yiq(ref_img)
        y2, i2, q2 = yiq(dis_img)
    else:
        y1, y2 = ref_img[0], dis_img[0]

    def subsample(im):
        return _conv2d_same_np(im, 0.25 * np.ones((2, 2)))[::2, ::2]

    y1, y2 = subsample(y1), subsample(y2)
    if color:
        i1, i2, q1, q2 = map(subsample, (i1, i2, q1, q2))

    def haar_decompose(im, n_scales=3):
        coeffs = []
        for orient in range(2):
            for s in range(1, n_scales + 1):
                k = 2 ** s
                hf = 2.0 ** (-s) * np.ones((k, k))
                hf[: k // 2, :] = -hf[: k // 2, :]
                coeffs.append(_conv2d_same_np(im, hf if orient == 0 else hf.T))
        return np.stack(coeffs)

    c1, c2 = haar_decompose(y1), haar_decompose(y2)
    n_ch = 3 if color else 2
    ls = np.zeros(y1.shape + (n_ch,))
    w = np.zeros(y1.shape + (n_ch,))
    for o in range(2):
        w[:, :, o] = np.maximum(np.abs(c1[2 + o * 3]), np.abs(c2[2 + o * 3]))
        a = np.abs(c1[o * 3:o * 3 + 2])
        b = np.abs(c2[o * 3:o * 3 + 2])
        ls[:, :, o] = np.sum((2 * a * b + _C) / (a ** 2 + b ** 2 + _C), axis=0) / 2.0
    if color:
        mi1 = np.abs(_conv2d_same_np(i1, 0.25 * np.ones((2, 2))))
        mi2 = np.abs(_conv2d_same_np(i2, 0.25 * np.ones((2, 2))))
        mq1 = np.abs(_conv2d_same_np(q1, 0.25 * np.ones((2, 2))))
        mq2 = np.abs(_conv2d_same_np(q2, 0.25 * np.ones((2, 2))))
        si = (2 * mi1 * mi2 + _C) / (mi1 ** 2 + mi2 ** 2 + _C)
        sq = (2 * mq1 * mq2 + _C) / (mq1 ** 2 + mq2 ** 2 + _C)
        ls[:, :, 2] = (si + sq) / 2.0
        w[:, :, 2] = (w[:, :, 0] + w[:, :, 1]) / 2.0
    sig = 1.0 / (1.0 + np.exp(-_ALPHA * ls))
    r = np.sum(sig * w) / np.sum(w)
    return (np.log(r / (1.0 - r)) / _ALPHA) ** 2


# ---------------------------------------------------------------------------
if __name__ == "__main__":
    key = jax.random.PRNGKey(0)
    k1, k2 = jax.random.split(key)
    B, C, H, W = 2, 3, 32, 32
    x = jax.random.uniform(k1, (B, C, H, W), jnp.float32, -1.0, 1.0)
    y = jax.random.uniform(k2, (B, C, H, W), jnp.float32, -1.0, 1.0)

    loss = jax.jit(haarpsi_loss)(x, y)
    loss_val = float(jax.block_until_ready(loss))

    # Reference check (numpy, float64, direct 'same' convolutions).
    xn = np.asarray((x + 1.0) * 0.5 * 255.0, np.float64)
    yn = np.asarray((y + 1.0) * 0.5 * 255.0, np.float64)
    ref_loss = 1.0 - float(np.mean([_haarpsi_ref_np(xn[b], yn[b]) for b in range(B)]))

    assert np.isfinite(loss_val), loss_val
    assert abs(loss_val - ref_loss) < 2e-2, (loss_val, ref_loss)
    print("KERNEL_OK")
</pallas_src>

<mosaic_0001>
module attributes {stable_mosaic.version = 11 : i64} {
  func.func @kernel(%arg0: i32, %arg1: memref<1x3x32x32xf32, #tpu.memory_space<vmem>>, %arg2: memref<1x3x32x32xf32, #tpu.memory_space<vmem>>, %arg3: memref<32x96xbf16, #tpu.memory_space<vmem>>, %arg4: memref<6x32x16xbf16, #tpu.memory_space<vmem>>, %arg5: memref<32x16xbf16, #tpu.memory_space<vmem>>, %arg6: memref<32x16xbf16, #tpu.memory_space<vmem>>, %arg7: memref<1x1x1xf32, #tpu.memory_space<vmem>>) attributes {dimension_semantics = [#tpu.dimension_semantics<parallel>], iteration_bounds = array<i64: 2>, scalar_prefetch = 0 : i64, scratch_operands = 0 : i64, tpu.core_type = #tpu.core_type<tc>, window_params = [{transform_indices = @transform_0, window_bounds = array<i64: 1, 3, 32, 32>}, {transform_indices = @transform_1, window_bounds = array<i64: 1, 3, 32, 32>}, {pipeline_mode = #tpu.pipeline_mode<synchronous>, transform_indices = @transform_2, window_bounds = array<i64: 32, 96>}, {pipeline_mode = #tpu.pipeline_mode<synchronous>, transform_indices = @transform_3, window_bounds = array<i64: 6, 32, 16>}, {pipeline_mode = #tpu.pipeline_mode<synchronous>, transform_indices = @transform_4, window_bounds = array<i64: 32, 16>}, {pipeline_mode = #tpu.pipeline_mode<synchronous>, transform_indices = @transform_5, window_bounds = array<i64: 32, 16>}, {transform_indices = @transform_6, window_bounds = array<i64: 1, 1, 1>}]} {
    %c0 = arith.constant 0 : index
    %c0_0 = arith.constant 0 : index
    %c0_1 = arith.constant 0 : index
    %c0_2 = arith.constant 0 : index
    %0 = vector.load %arg1[%c0, %c0_0, %c0_1, %c0_2] : memref<1x3x32x32xf32, #tpu.memory_space<vmem>>, vector<1x3x32x32xf32>
    %cst = arith.constant 1.000000e+00 : f32
    %1 = vector.broadcast %cst : f32 to vector<1x3x32x32xf32>
    %2 = arith.addf %0, %1 : vector<1x3x32x32xf32>
    %cst_3 = arith.constant 1.275000e+02 : f32
    %3 = vector.broadcast %cst_3 : f32 to vector<1x3x32x32xf32>
    %4 = arith.mulf %2, %3 : vector<1x3x32x32xf32>
    %5 = vector.extract_strided_slice %4 {offsets = [0, 0, 0, 0], sizes = [1, 1, 32, 32], strides = [1, 1, 1, 1]} : vector<1x3x32x32xf32> to vector<1x1x32x32xf32>
    %6 = vector.shape_cast %5 : vector<1x1x32x32xf32> to vector<1x32x32xf32>
    %7 = vector.extract_strided_slice %4 {offsets = [0, 1, 0, 0], sizes = [1, 1, 32, 32], strides = [1, 1, 1, 1]} : vector<1x3x32x32xf32> to vector<1x1x32x32xf32>
    %8 = vector.shape_cast %7 : vector<1x1x32x32xf32> to vector<1x32x32xf32>
    %9 = vector.extract_strided_slice %4 {offsets = [0, 2, 0, 0], sizes = [1, 1, 32, 32], strides = [1, 1, 1, 1]} : vector<1x3x32x32xf32> to vector<1x1x32x32xf32>
    %10 = vector.shape_cast %9 : vector<1x1x32x32xf32> to vector<1x32x32xf32>
    %cst_4 = arith.constant 2.990000e-01 : f32
    %11 = vector.broadcast %cst_4 : f32 to vector<1x32x32xf32>
    %12 = arith.mulf %11, %6 : vector<1x32x32xf32>
    %cst_5 = arith.constant 5.870000e-01 : f32
    %13 = vector.broadcast %cst_5 : f32 to vector<1x32x32xf32>
    %14 = arith.mulf %13, %8 : vector<1x32x32xf32>
    %15 = arith.addf %12, %14 : vector<1x32x32xf32>
    %cst_6 = arith.constant 1.140000e-01 : f32
    %16 = vector.broadcast %cst_6 : f32 to vector<1x32x32xf32>
    %17 = arith.mulf %16, %10 : vector<1x32x32xf32>
    %18 = arith.addf %15, %17 : vector<1x32x32xf32>
    %cst_7 = arith.constant 5.960000e-01 : f32
    %19 = vector.broadcast %cst_7 : f32 to vector<1x32x32xf32>
    %20 = arith.mulf %19, %6 : vector<1x32x32xf32>
    %cst_8 = arith.constant 2.740000e-01 : f32
    %21 = vector.broadcast %cst_8 : f32 to vector<1x32x32xf32>
    %22 = arith.mulf %21, %8 : vector<1x32x32xf32>
    %23 = arith.subf %20, %22 : vector<1x32x32xf32>
    %cst_9 = arith.constant 3.220000e-01 : f32
    %24 = vector.broadcast %cst_9 : f32 to vector<1x32x32xf32>
    %25 = arith.mulf %24, %10 : vector<1x32x32xf32>
    %26 = arith.subf %23, %25 : vector<1x32x32xf32>
    %cst_10 = arith.constant 2.110000e-01 : f32
    %27 = vector.broadcast %cst_10 : f32 to vector<1x32x32xf32>
    %28 = arith.mulf %27, %6 : vector<1x32x32xf32>
    %cst_11 = arith.constant 5.230000e-01 : f32
    %29 = vector.broadcast %cst_11 : f32 to vector<1x32x32xf32>
    %30 = arith.mulf %29, %8 : vector<1x32x32xf32>
    %31 = arith.subf %28, %30 : vector<1x32x32xf32>
    %cst_12 = arith.constant 3.120000e-01 : f32
    %32 = vector.broadcast %cst_12 : f32 to vector<1x32x32xf32>
    %33 = arith.mulf %32, %10 : vector<1x32x32xf32>
    %34 = arith.addf %31, %33 : vector<1x32x32xf32>
    %c0_13 = arith.constant 0 : index
    %c0_14 = arith.constant 0 : index
    %c0_15 = arith.constant 0 : index
    %c0_16 = arith.constant 0 : index
    %35 = vector.load %arg2[%c0_13, %c0_14, %c0_15, %c0_16] : memref<1x3x32x32xf32, #tpu.memory_space<vmem>>, vector<1x3x32x32xf32>
    %cst_17 = arith.constant 1.000000e+00 : f32
    %36 = vector.broadcast %cst_17 : f32 to vector<1x3x32x32xf32>
    %37 = arith.addf %35, %36 : vector<1x3x32x32xf32>
    %cst_18 = arith.constant 1.275000e+02 : f32
    %38 = vector.broadcast %cst_18 : f32 to vector<1x3x32x32xf32>
    %39 = arith.mulf %37, %38 : vector<1x3x32x32xf32>
    %40 = vector.extract_strided_slice %39 {offsets = [0, 0, 0, 0], sizes = [1, 1, 32, 32], strides = [1, 1, 1, 1]} : vector<1x3x32x32xf32> to vector<1x1x32x32xf32>
    %41 = vector.shape_cast %40 : vector<1x1x32x32xf32> to vector<1x32x32xf32>
    %42 = vector.extract_strided_slice %39 {offsets = [0, 1, 0, 0], sizes = [1, 1, 32, 32], strides = [1, 1, 1, 1]} : vector<1x3x32x32xf32> to vector<1x1x32x32xf32>
    %43 = vector.shape_cast %42 : vector<1x1x32x32xf32> to vector<1x32x32xf32>
    %44 = vector.extract_strided_slice %39 {offsets = [0, 2, 0, 0], sizes = [1, 1, 32, 32], strides = [1, 1, 1, 1]} : vector<1x3x32x32xf32> to vector<1x1x32x32xf32>
    %45 = vector.shape_cast %44 : vector<1x1x32x32xf32> to vector<1x32x32xf32>
    %cst_19 = arith.constant 2.990000e-01 : f32
    %46 = vector.broadcast %cst_19 : f32 to vector<1x32x32xf32>
    %47 = arith.mulf %46, %41 : vector<1x32x32xf32>
    %cst_20 = arith.constant 5.870000e-01 : f32
    %48 = vector.broadcast %cst_20 : f32 to vector<1x32x32xf32>
    %49 = arith.mulf %48, %43 : vector<1x32x32xf32>
    %50 = arith.addf %47, %49 : vector<1x32x32xf32>
    %cst_21 = arith.constant 1.140000e-01 : f32
    %51 = vector.broadcast %cst_21 : f32 to vector<1x32x32xf32>
    %52 = arith.mulf %51, %45 : vector<1x32x32xf32>
    %53 = arith.addf %50, %52 : vector<1x32x32xf32>
    %cst_22 = arith.constant 5.960000e-01 : f32
    %54 = vector.broadcast %cst_22 : f32 to vector<1x32x32xf32>
    %55 = arith.mulf %54, %41 : vector<1x32x32xf32>
    %cst_23 = arith.constant 2.740000e-01 : f32
    %56 = vector.broadcast %cst_23 : f32 to vector<1x32x32xf32>
    %57 = arith.mulf %56, %43 : vector<1x32x32xf32>
    %58 = arith.subf %55, %57 : vector<1x32x32xf32>
    %cst_24 = arith.constant 3.220000e-01 : f32
    %59 = vector.broadcast %cst_24 : f32 to vector<1x32x32xf32>
    %60 = arith.mulf %59, %45 : vector<1x32x32xf32>
    %61 = arith.subf %58, %60 : vector<1x32x32xf32>
    %cst_25 = arith.constant 2.110000e-01 : f32
    %62 = vector.broadcast %cst_25 : f32 to vector<1x32x32xf32>
    %63 = arith.mulf %62, %41 : vector<1x32x32xf32>
    %cst_26 = arith.constant 5.230000e-01 : f32
    %64 = vector.broadcast %cst_26 : f32 to vector<1x32x32xf32>
    %65 = arith.mulf %64, %43 : vector<1x32x32xf32>
    %66 = arith.subf %63, %65 : vector<1x32x32xf32>
    %cst_27 = arith.constant 3.120000e-01 : f32
    %67 = vector.broadcast %cst_27 : f32 to vector<1x32x32xf32>
    %68 = arith.mulf %67, %45 : vector<1x32x32xf32>
    %69 = arith.addf %66, %68 : vector<1x32x32xf32>
    %70 = vector.shape_cast %18 : vector<1x32x32xf32> to vector<32x32xf32>
    %c0_28 = arith.constant 0 : index
    %c0_29 = arith.constant 0 : index
    %71 = vector.load %arg3[%c0_28, %c0_29] : memref<32x96xbf16, #tpu.memory_space<vmem>>, vector<32x96xbf16>
    %72 = arith.truncf %70 : vector<32x32xf32> to vector<32x32xbf16>
    %cst_30 = arith.constant dense<0.000000e+00> : vector<32x96xf32>
    %73 = tpu.matmul %72, %71, %cst_30 {dimension_numbers = #tpu.dot_dimension_numbers<[1], [0], [0], [1], [0, 0, 1, 1], [], []>} : vector<32x32xbf16>, vector<32x96xbf16>, vector<32x96xf32> -> vector<32x96xf32>
    %74 = vector.shape_cast %73 : vector<32x96xf32> to vector<1x32x96xf32>
    %75 = arith.truncf %74 : vector<1x32x96xf32> to vector<1x32x96xbf16>
    %76 = tpu.transpose %75, [0, 2, 1] : vector<1x32x96xbf16> -> vector<1x96x32xbf16>
    %77 = vector.extract_strided_slice %76 {offsets = [0, 0, 0], sizes = [1, 16, 32], strides = [1, 1, 1]} : vector<1x96x32xbf16> to vector<1x16x32xbf16>
    %78 = vector.shape_cast %77 : vector<1x16x32xbf16> to vector<16x32xbf16>
    %c0_31 = arith.constant 0 : index
    %c0_32 = arith.constant 0 : index
    %c0_33 = arith.constant 0 : index
    %79 = vector.load %arg4[%c0_31, %c0_32, %c0_33] : memref<6x32x16xbf16, #tpu.memory_space<vmem>>, vector<1x32x16xbf16>
    %80 = vector.shape_cast %79 : vector<1x32x16xbf16> to vector<32x16xbf16>
    %cst_34 = arith.constant dense<0.000000e+00> : vector<16x16xf32>
    %81 = tpu.matmul %78, %80, %cst_34 {dimension_numbers = #tpu.dot_dimension_numbers<[1], [0], [0], [1], [0, 0, 1, 1], [], []>} : vector<16x32xbf16>, vector<32x16xbf16>, vector<16x16xf32> -> vector<16x16xf32>
    %82 = vector.shape_cast %81 : vector<16x16xf32> to vector<1x16x16xf32>
    %83 = math.absf %82 : vector<1x16x16xf32>
    %84 = vector.extract_strided_slice %76 {offsets = [0, 16, 0], sizes = [1, 16, 32], strides = [1, 1, 1]} : vector<1x96x32xbf16> to vector<1x16x32xbf16>
    %85 = vector.shape_cast %84 : vector<1x16x32xbf16> to vector<16x32xbf16>
    %c1 = arith.constant 1 : index
    %c0_35 = arith.constant 0 : index
    %c0_36 = arith.constant 0 : index
    %86 = vector.load %arg4[%c1, %c0_35, %c0_36] : memref<6x32x16xbf16, #tpu.memory_space<vmem>>, vector<1x32x16xbf16>
    %87 = vector.shape_cast %86 : vector<1x32x16xbf16> to vector<32x16xbf16>
    %cst_37 = arith.constant dense<0.000000e+00> : vector<16x16xf32>
    %88 = tpu.matmul %85, %87, %cst_37 {dimension_numbers = #tpu.dot_dimension_numbers<[1], [0], [0], [1], [0, 0, 1, 1], [], []>} : vector<16x32xbf16>, vector<32x16xbf16>, vector<16x16xf32> -> vector<16x16xf32>
    %89 = vector.shape_cast %88 : vector<16x16xf32> to vector<1x16x16xf32>
    %90 = math.absf %89 : vector<1x16x16xf32>
    %91 = vector.extract_strided_slice %76 {offsets = [0, 32, 0], sizes = [1, 16, 32], strides = [1, 1, 1]} : vector<1x96x32xbf16> to vector<1x16x32xbf16>
    %92 = vector.shape_cast %91 : vector<1x16x32xbf16> to vector<16x32xbf16>
    %c2 = arith.constant 2 : index
    %c0_38 = arith.constant 0 : index
    %c0_39 = arith.constant 0 : index
    %93 = vector.load %arg4[%c2, %c0_38, %c0_39] : memref<6x32x16xbf16, #tpu.memory_space<vmem>>, vector<1x32x16xbf16>
    %94 = vector.shape_cast %93 : vector<1x32x16xbf16> to vector<32x16xbf16>
    %cst_40 = arith.constant dense<0.000000e+00> : vector<16x16xf32>
    %95 = tpu.matmul %92, %94, %cst_40 {dimension_numbers = #tpu.dot_dimension_numbers<[1], [0], [0], [1], [0, 0, 1, 1], [], []>} : vector<16x32xbf16>, vector<32x16xbf16>, vector<16x16xf32> -> vector<16x16xf32>
    %96 = vector.shape_cast %95 : vector<16x16xf32> to vector<1x16x16xf32>
    %97 = math.absf %96 : vector<1x16x16xf32>
    %98 = vector.extract_strided_slice %76 {offsets = [0, 48, 0], sizes = [1, 16, 32], strides = [1, 1, 1]} : vector<1x96x32xbf16> to vector<1x16x32xbf16>
    %99 = vector.shape_cast %98 : vector<1x16x32xbf16> to vector<16x32xbf16>
    %c3 = arith.constant 3 : index
    %c0_41 = arith.constant 0 : index
    %c0_42 = arith.constant 0 : index
    %100 = vector.load %arg4[%c3, %c0_41, %c0_42] : memref<6x32x16xbf16, #tpu.memory_space<vmem>>, vector<1x32x16xbf16>
    %101 = vector.shape_cast %100 : vector<1x32x16xbf16> to vector<32x16xbf16>
    %cst_43 = arith.constant dense<0.000000e+00> : vector<16x16xf32>
    %102 = tpu.matmul %99, %101, %cst_43 {dimension_numbers = #tpu.dot_dimension_numbers<[1], [0], [0], [1], [0, 0, 1, 1], [], []>} : vector<16x32xbf16>, vector<32x16xbf16>, vector<16x16xf32> -> vector<16x16xf32>
    %103 = vector.shape_cast %102 : vector<16x16xf32> to vector<1x16x16xf32>
    %104 = math.absf %103 : vector<1x16x16xf32>
    %105 = vector.extract_strided_slice %76 {offsets = [0, 64, 0], sizes = [1, 16, 32], strides = [1, 1, 1]} : vector<1x96x32xbf16> to vector<1x16x32xbf16>
    %106 = vector.shape_cast %105 : vector<1x16x32xbf16> to vector<16x32xbf16>
    %c4 = arith.constant 4 : index
    %c0_44 = arith.constant 0 : index
    %c0_45 = arith.constant 0 : index
    %107 = vector.load %arg4[%c4, %c0_44, %c0_45] : memref<6x32x16xbf16, #tpu.memory_space<vmem>>, vector<1x32x16xbf16>
    %108 = vector.shape_cast %107 : vector<1x32x16xbf16> to vector<32x16xbf16>
    %cst_46 = arith.constant dense<0.000000e+00> : vector<16x16xf32>
    %109 = tpu.matmul %106, %108, %cst_46 {dimension_numbers = #tpu.dot_dimension_numbers<[1], [0], [0], [1], [0, 0, 1, 1], [], []>} : vector<16x32xbf16>, vector<32x16xbf16>, vector<16x16xf32> -> vector<16x16xf32>
    %110 = vector.shape_cast %109 : vector<16x16xf32> to vector<1x16x16xf32>
    %111 = math.absf %110 : vector<1x16x16xf32>
    %112 = vector.extract_strided_slice %76 {offsets = [0, 80, 0], sizes = [1, 16, 32], strides = [1, 1, 1]} : vector<1x96x32xbf16> to vector<1x16x32xbf16>
    %113 = vector.shape_cast %112 : vector<1x16x32xbf16> to vector<16x32xbf16>
    %c5 = arith.constant 5 : index
    %c0_47 = arith.constant 0 : index
    %c0_48 = arith.constant 0 : index
    %114 = vector.load %arg4[%c5, %c0_47, %c0_48] : memref<6x32x16xbf16, #tpu.memory_space<vmem>>, vector<1x32x16xbf16>
    %115 = vector.shape_cast %114 : vector<1x32x16xbf16> to vector<32x16xbf16>
    %cst_49 = arith.constant dense<0.000000e+00> : vector<16x16xf32>
    %116 = tpu.matmul %113, %115, %cst_49 {dimension_numbers = #tpu.dot_dimension_numbers<[1], [0], [0], [1], [0, 0, 1, 1], [], []>} : vector<16x32xbf16>, vector<32x16xbf16>, vector<16x16xf32> -> vector<16x16xf32>
    %117 = vector.shape_cast %116 : vector<16x16xf32> to vector<1x16x16xf32>
    %118 = math.absf %117 : vector<1x16x16xf32>
    %119 = vector.shape_cast %53 : vector<1x32x32xf32> to vector<32x32xf32>
    %c0_50 = arith.constant 0 : index
    %c0_51 = arith.constant 0 : index
    %120 = vector.load %arg3[%c0_50, %c0_51] : memref<32x96xbf16, #tpu.memory_space<vmem>>, vector<32x96xbf16>
    %121 = arith.truncf %119 : vector<32x32xf32> to vector<32x32xbf16>
    %cst_52 = arith.constant dense<0.000000e+00> : vector<32x96xf32>
    %122 = tpu.matmul %121, %120, %cst_52 {dimension_numbers = #tpu.dot_dimension_numbers<[1], [0], [0], [1], [0, 0, 1, 1], [], []>} : vector<32x32xbf16>, vector<32x96xbf16>, vector<32x96xf32> -> vector<32x96xf32>
    %123 = vector.shape_cast %122 : vector<32x96xf32> to vector<1x32x96xf32>
    %124 = arith.truncf %123 : vector<1x32x96xf32> to vector<1x32x96xbf16>
    %125 = tpu.transpose %124, [0, 2, 1] : vector<1x32x96xbf16> -> vector<1x96x32xbf16>
    %126 = vector.extract_strided_slice %125 {offsets = [0, 0, 0], sizes = [1, 16, 32], strides = [1, 1, 1]} : vector<1x96x32xbf16> to vector<1x16x32xbf16>
    %127 = vector.shape_cast %126 : vector<1x16x32xbf16> to vector<16x32xbf16>
    %c0_53 = arith.constant 0 : index
    %c0_54 = arith.constant 0 : index
    %c0_55 = arith.constant 0 : index
    %128 = vector.load %arg4[%c0_53, %c0_54, %c0_55] : memref<6x32x16xbf16, #tpu.memory_space<vmem>>, vector<1x32x16xbf16>
    %129 = vector.shape_cast %128 : vector<1x32x16xbf16> to vector<32x16xbf16>
    %cst_56 = arith.constant dense<0.000000e+00> : vector<16x16xf32>
    %130 = tpu.matmul %127, %129, %cst_56 {dimension_numbers = #tpu.dot_dimension_numbers<[1], [0], [0], [1], [0, 0, 1, 1], [], []>} : vector<16x32xbf16>, vector<32x16xbf16>, vector<16x16xf32> -> vector<16x16xf32>
    %131 = vector.shape_cast %130 : vector<16x16xf32> to vector<1x16x16xf32>
    %132 = math.absf %131 : vector<1x16x16xf32>
    %133 = vector.extract_strided_slice %125 {offsets = [0, 16, 0], sizes = [1, 16, 32], strides = [1, 1, 1]} : vector<1x96x32xbf16> to vector<1x16x32xbf16>
    %134 = vector.shape_cast %133 : vector<1x16x32xbf16> to vector<16x32xbf16>
    %c1_57 = arith.constant 1 : index
    %c0_58 = arith.constant 0 : index
    %c0_59 = arith.constant 0 : index
    %135 = vector.load %arg4[%c1_57, %c0_58, %c0_59] : memref<6x32x16xbf16, #tpu.memory_space<vmem>>, vector<1x32x16xbf16>
    %136 = vector.shape_cast %135 : vector<1x32x16xbf16> to vector<32x16xbf16>
    %cst_60 = arith.constant dense<0.000000e+00> : vector<16x16xf32>
    %137 = tpu.matmul %134, %136, %cst_60 {dimension_numbers = #tpu.dot_dimension_numbers<[1], [0], [0], [1], [0, 0, 1, 1], [], []>} : vector<16x32xbf16>, vector<32x16xbf16>, vector<16x16xf32> -> vector<16x16xf32>
    %138 = vector.shape_cast %137 : vector<16x16xf32> to vector<1x16x16xf32>
    %139 = math.absf %138 : vector<1x16x16xf32>
    %140 = vector.extract_strided_slice %125 {offsets = [0, 32, 0], sizes = [1, 16, 32], strides = [1, 1, 1]} : vector<1x96x32xbf16> to vector<1x16x32xbf16>
    %141 = vector.shape_cast %140 : vector<1x16x32xbf16> to vector<16x32xbf16>
    %c2_61 = arith.constant 2 : index
    %c0_62 = arith.constant 0 : index
    %c0_63 = arith.constant 0 : index
    %142 = vector.load %arg4[%c2_61, %c0_62, %c0_63] : memref<6x32x16xbf16, #tpu.memory_space<vmem>>, vector<1x32x16xbf16>
    %143 = vector.shape_cast %142 : vector<1x32x16xbf16> to vector<32x16xbf16>
    %cst_64 = arith.constant dense<0.000000e+00> : vector<16x16xf32>
    %144 = tpu.matmul %141, %143, %cst_64 {dimension_numbers = #tpu.dot_dimension_numbers<[1], [0], [0], [1], [0, 0, 1, 1], [], []>} : vector<16x32xbf16>, vector<32x16xbf16>, vector<16x16xf32> -> vector<16x16xf32>
    %145 = vector.shape_cast %144 : vector<16x16xf32> to vector<1x16x16xf32>
    %146 = math.absf %145 : vector<1x16x16xf32>
    %147 = vector.extract_strided_slice %125 {offsets = [0, 48, 0], sizes = [1, 16, 32], strides = [1, 1, 1]} : vector<1x96x32xbf16> to vector<1x16x32xbf16>
    %148 = vector.shape_cast %147 : vector<1x16x32xbf16> to vector<16x32xbf16>
    %c3_65 = arith.constant 3 : index
    %c0_66 = arith.constant 0 : index
    %c0_67 = arith.constant 0 : index
    %149 = vector.load %arg4[%c3_65, %c0_66, %c0_67] : memref<6x32x16xbf16, #tpu.memory_space<vmem>>, vector<1x32x16xbf16>
    %150 = vector.shape_cast %149 : vector<1x32x16xbf16> to vector<32x16xbf16>
    %cst_68 = arith.constant dense<0.000000e+00> : vector<16x16xf32>
    %151 = tpu.matmul %148, %150, %cst_68 {dimension_numbers = #tpu.dot_dimension_numbers<[1], [0], [0], [1], [0, 0, 1, 1], [], []>} : vector<16x32xbf16>, vector<32x16xbf16>, vector<16x16xf32> -> vector<16x16xf32>
    %152 = vector.shape_cast %151 : vector<16x16xf32> to vector<1x16x16xf32>
    %153 = math.absf %152 : vector<1x16x16xf32>
    %154 = vector.extract_strided_slice %125 {offsets = [0, 64, 0], sizes = [1, 16, 32], strides = [1, 1, 1]} : vector<1x96x32xbf16> to vector<1x16x32xbf16>
    %155 = vector.shape_cast %154 : vector<1x16x32xbf16> to vector<16x32xbf16>
    %c4_69 = arith.constant 4 : index
    %c0_70 = arith.constant 0 : index
    %c0_71 = arith.constant 0 : index
    %156 = vector.load %arg4[%c4_69, %c0_70, %c0_71] : memref<6x32x16xbf16, #tpu.memory_space<vmem>>, vector<1x32x16xbf16>
    %157 = vector.shape_cast %156 : vector<1x32x16xbf16> to vector<32x16xbf16>
    %cst_72 = arith.constant dense<0.000000e+00> : vector<16x16xf32>
    %158 = tpu.matmul %155, %157, %cst_72 {dimension_numbers = #tpu.dot_dimension_numbers<[1], [0], [0], [1], [0, 0, 1, 1], [], []>} : vector<16x32xbf16>, vector<32x16xbf16>, vector<16x16xf32> -> vector<16x16xf32>
    %159 = vector.shape_cast %158 : vector<16x16xf32> to vector<1x16x16xf32>
    %160 = math.absf %159 : vector<1x16x16xf32>
    %161 = vector.extract_strided_slice %125 {offsets = [0, 80, 0], sizes = [1, 16, 32], strides = [1, 1, 1]} : vector<1x96x32xbf16> to vector<1x16x32xbf16>
    %162 = vector.shape_cast %161 : vector<1x16x32xbf16> to vector<16x32xbf16>
    %c5_73 = arith.constant 5 : index
    %c0_74 = arith.constant 0 : index
    %c0_75 = arith.constant 0 : index
    %163 = vector.load %arg4[%c5_73, %c0_74, %c0_75] : memref<6x32x16xbf16, #tpu.memory_space<vmem>>, vector<1x32x16xbf16>
    %164 = vector.shape_cast %163 : vector<1x32x16xbf16> to vector<32x16xbf16>
    %cst_76 = arith.constant dense<0.000000e+00> : vector<16x16xf32>
    %165 = tpu.matmul %162, %164, %cst_76 {dimension_numbers = #tpu.dot_dimension_numbers<[1], [0], [0], [1], [0, 0, 1, 1], [], []>} : vector<16x32xbf16>, vector<32x16xbf16>, vector<16x16xf32> -> vector<16x16xf32>
    %166 = vector.shape_cast %165 : vector<16x16xf32> to vector<1x16x16xf32>
    %167 = math.absf %166 : vector<1x16x16xf32>
    %cst_77 = arith.constant 2.000000e+00 : f32
    %168 = vector.broadcast %cst_77 : f32 to vector<1x16x16xf32>
    %169 = arith.mulf %168, %83 : vector<1x16x16xf32>
    %170 = arith.mulf %169, %132 : vector<1x16x16xf32>
    %cst_78 = arith.constant 3.000000e+01 : f32
    %171 = vector.broadcast %cst_78 : f32 to vector<1x16x16xf32>
    %172 = arith.addf %170, %171 : vector<1x16x16xf32>
    %173 = arith.mulf %83, %83 : vector<1x16x16xf32>
    %174 = arith.mulf %132, %132 : vector<1x16x16xf32>
    %175 = arith.addf %173, %174 : vector<1x16x16xf32>
    %cst_79 = arith.constant 3.000000e+01 : f32
    %176 = vector.broadcast %cst_79 : f32 to vector<1x16x16xf32>
    %177 = arith.addf %175, %176 : vector<1x16x16xf32>
    %178 = tpu.reciprocal %177 {approx = true} : vector<1x16x16xf32> -> vector<1x16x16xf32>
    %179 = arith.mulf %172, %178 : vector<1x16x16xf32>
    %cst_80 = arith.constant 2.000000e+00 : f32
    %180 = vector.broadcast %cst_80 : f32 to vector<1x16x16xf32>
    %181 = arith.mulf %180, %90 : vector<1x16x16xf32>
    %182 = arith.mulf %181, %139 : vector<1x16x16xf32>
    %cst_81 = arith.constant 3.000000e+01 : f32
    %183 = vector.broadcast %cst_81 : f32 to vector<1x16x16xf32>
    %184 = arith.addf %182, %183 : vector<1x16x16xf32>
    %185 = arith.mulf %90, %90 : vector<1x16x16xf32>
    %186 = arith.mulf %139, %139 : vector<1x16x16xf32>
    %187 = arith.addf %185, %186 : vector<1x16x16xf32>
    %cst_82 = arith.constant 3.000000e+01 : f32
    %188 = vector.broadcast %cst_82 : f32 to vector<1x16x16xf32>
    %189 = arith.addf %187, %188 : vector<1x16x16xf32>
    %190 = tpu.reciprocal %189 {approx = true} : vector<1x16x16xf32> -> vector<1x16x16xf32>
    %191 = arith.mulf %184, %190 : vector<1x16x16xf32>
    %192 = arith.addf %179, %191 : vector<1x16x16xf32>
    %cst_83 = arith.constant 5.000000e-01 : f32
    %193 = vector.broadcast %cst_83 : f32 to vector<1x16x16xf32>
    %194 = arith.mulf %193, %192 : vector<1x16x16xf32>
    %195 = arith.maximumf %97, %146 : vector<1x16x16xf32>
    %cst_84 = arith.constant 2.000000e+00 : f32
    %196 = vector.broadcast %cst_84 : f32 to vector<1x16x16xf32>
    %197 = arith.mulf %196, %104 : vector<1x16x16xf32>
    %198 = arith.mulf %197, %153 : vector<1x16x16xf32>
    %cst_85 = arith.constant 3.000000e+01 : f32
    %199 = vector.broadcast %cst_85 : f32 to vector<1x16x16xf32>
    %200 = arith.addf %198, %199 : vector<1x16x16xf32>
    %201 = arith.mulf %104, %104 : vector<1x16x16xf32>
    %202 = arith.mulf %153, %153 : vector<1x16x16xf32>
    %203 = arith.addf %201, %202 : vector<1x16x16xf32>
    %cst_86 = arith.constant 3.000000e+01 : f32
    %204 = vector.broadcast %cst_86 : f32 to vector<1x16x16xf32>
    %205 = arith.addf %203, %204 : vector<1x16x16xf32>
    %206 = tpu.reciprocal %205 {approx = true} : vector<1x16x16xf32> -> vector<1x16x16xf32>
    %207 = arith.mulf %200, %206 : vector<1x16x16xf32>
    %cst_87 = arith.constant 2.000000e+00 : f32
    %208 = vector.broadcast %cst_87 : f32 to vector<1x16x16xf32>
    %209 = arith.mulf %208, %111 : vector<1x16x16xf32>
    %210 = arith.mulf %209, %160 : vector<1x16x16xf32>
    %cst_88 = arith.constant 3.000000e+01 : f32
    %211 = vector.broadcast %cst_88 : f32 to vector<1x16x16xf32>
    %212 = arith.addf %210, %211 : vector<1x16x16xf32>
    %213 = arith.mulf %111, %111 : vector<1x16x16xf32>
    %214 = arith.mulf %160, %160 : vector<1x16x16xf32>
    %215 = arith.addf %213, %214 : vector<1x16x16xf32>
    %cst_89 = arith.constant 3.000000e+01 : f32
    %216 = vector.broadcast %cst_89 : f32 to vector<1x16x16xf32>
    %217 = arith.addf %215, %216 : vector<1x16x16xf32>
    %218 = tpu.reciprocal %217 {approx = true} : vector<1x16x16xf32> -> vector<1x16x16xf32>
    %219 = arith.mulf %212, %218 : vector<1x16x16xf32>
    %220 = arith.addf %207, %219 : vector<1x16x16xf32>
    %cst_90 = arith.constant 5.000000e-01 : f32
    %221 = vector.broadcast %cst_90 : f32 to vector<1x16x16xf32>
    %222 = arith.mulf %221, %220 : vector<1x16x16xf32>
    %223 = arith.maximumf %118, %167 : vector<1x16x16xf32>
    %224 = vector.shape_cast %26 : vector<1x32x32xf32> to vector<32x32xf32>
    %c0_91 = arith.constant 0 : index
    %c0_92 = arith.constant 0 : index
    %225 = vector.load %arg5[%c0_91, %c0_92] : memref<32x16xbf16, #tpu.memory_space<vmem>>, vector<32x16xbf16>
    %226 = arith.truncf %224 : vector<32x32xf32> to vector<32x32xbf16>
    %cst_93 = arith.constant dense<0.000000e+00> : vector<32x16xf32>
    %227 = tpu.matmul %226, %225, %cst_93 {dimension_numbers = #tpu.dot_dimension_numbers<[1], [0], [0], [1], [0, 0, 1, 1], [], []>} : vector<32x32xbf16>, vector<32x16xbf16>, vector<32x16xf32> -> vector<32x16xf32>
    %228 = vector.shape_cast %227 : vector<32x16xf32> to vector<1x32x16xf32>
    %229 = arith.truncf %228 : vector<1x32x16xf32> to vector<1x32x16xbf16>
    %230 = tpu.transpose %229, [0, 2, 1] : vector<1x32x16xbf16> -> vector<1x16x32xbf16>
    %231 = vector.shape_cast %230 : vector<1x16x32xbf16> to vector<16x32xbf16>
    %c0_94 = arith.constant 0 : index
    %c0_95 = arith.constant 0 : index
    %232 = vector.load %arg6[%c0_94, %c0_95] : memref<32x16xbf16, #tpu.memory_space<vmem>>, vector<32x16xbf16>
    %cst_96 = arith.constant dense<0.000000e+00> : vector<16x16xf32>
    %233 = tpu.matmul %231, %232, %cst_96 {dimension_numbers = #tpu.dot_dimension_numbers<[1], [0], [0], [1], [0, 0, 1, 1], [], []>} : vector<16x32xbf16>, vector<32x16xbf16>, vector<16x16xf32> -> vector<16x16xf32>
    %234 = vector.shape_cast %233 : vector<16x16xf32> to vector<1x16x16xf32>
    %235 = math.absf %234 : vector<1x16x16xf32>
    %236 = vector.shape_cast %34 : vector<1x32x32xf32> to vector<32x32xf32>
    %c0_97 = arith.constant 0 : index
    %c0_98 = arith.constant 0 : index
    %237 = vector.load %arg5[%c0_97, %c0_98] : memref<32x16xbf16, #tpu.memory_space<vmem>>, vector<32x16xbf16>
    %238 = arith.truncf %236 : vector<32x32xf32> to vector<32x32xbf16>
    %cst_99 = arith.constant dense<0.000000e+00> : vector<32x16xf32>
    %239 = tpu.matmul %238, %237, %cst_99 {dimension_numbers = #tpu.dot_dimension_numbers<[1], [0], [0], [1], [0, 0, 1, 1], [], []>} : vector<32x32xbf16>, vector<32x16xbf16>, vector<32x16xf32> -> vector<32x16xf32>
    %240 = vector.shape_cast %239 : vector<32x16xf32> to vector<1x32x16xf32>
    %241 = arith.truncf %240 : vector<1x32x16xf32> to vector<1x32x16xbf16>
    %242 = tpu.transpose %241, [0, 2, 1] : vector<1x32x16xbf16> -> vector<1x16x32xbf16>
    %243 = vector.shape_cast %242 : vector<1x16x32xbf16> to vector<16x32xbf16>
    %c0_100 = arith.constant 0 : index
    %c0_101 = arith.constant 0 : index
    %244 = vector.load %arg6[%c0_100, %c0_101] : memref<32x16xbf16, #tpu.memory_space<vmem>>, vector<32x16xbf16>
    %cst_102 = arith.constant dense<0.000000e+00> : vector<16x16xf32>
    %245 = tpu.matmul %243, %244, %cst_102 {dimension_numbers = #tpu.dot_dimension_numbers<[1], [0], [0], [1], [0, 0, 1, 1], [], []>} : vector<16x32xbf16>, vector<32x16xbf16>, vector<16x16xf32> -> vector<16x16xf32>
    %246 = vector.shape_cast %245 : vector<16x16xf32> to vector<1x16x16xf32>
    %247 = math.absf %246 : vector<1x16x16xf32>
    %248 = vector.shape_cast %61 : vector<1x32x32xf32> to vector<32x32xf32>
    %c0_103 = arith.constant 0 : index
    %c0_104 = arith.constant 0 : index
    %249 = vector.load %arg5[%c0_103, %c0_104] : memref<32x16xbf16, #tpu.memory_space<vmem>>, vector<32x16xbf16>
    %250 = arith.truncf %248 : vector<32x32xf32> to vector<32x32xbf16>
    %cst_105 = arith.constant dense<0.000000e+00> : vector<32x16xf32>
    %251 = tpu.matmul %250, %249, %cst_105 {dimension_numbers = #tpu.dot_dimension_numbers<[1], [0], [0], [1], [0, 0, 1, 1], [], []>} : vector<32x32xbf16>, vector<32x16xbf16>, vector<32x16xf32> -> vector<32x16xf32>
    %252 = vector.shape_cast %251 : vector<32x16xf32> to vector<1x32x16xf32>
    %253 = arith.truncf %252 : vector<1x32x16xf32> to vector<1x32x16xbf16>
    %254 = tpu.transpose %253, [0, 2, 1] : vector<1x32x16xbf16> -> vector<1x16x32xbf16>
    %255 = vector.shape_cast %254 : vector<1x16x32xbf16> to vector<16x32xbf16>
    %c0_106 = arith.constant 0 : index
    %c0_107 = arith.constant 0 : index
    %256 = vector.load %arg6[%c0_106, %c0_107] : memref<32x16xbf16, #tpu.memory_space<vmem>>, vector<32x16xbf16>
    %cst_108 = arith.constant dense<0.000000e+00> : vector<16x16xf32>
    %257 = tpu.matmul %255, %256, %cst_108 {dimension_numbers = #tpu.dot_dimension_numbers<[1], [0], [0], [1], [0, 0, 1, 1], [], []>} : vector<16x32xbf16>, vector<32x16xbf16>, vector<16x16xf32> -> vector<16x16xf32>
    %258 = vector.shape_cast %257 : vector<16x16xf32> to vector<1x16x16xf32>
    %259 = math.absf %258 : vector<1x16x16xf32>
    %260 = vector.shape_cast %69 : vector<1x32x32xf32> to vector<32x32xf32>
    %c0_109 = arith.constant 0 : index
    %c0_110 = arith.constant 0 : index
    %261 = vector.load %arg5[%c0_109, %c0_110] : memref<32x16xbf16, #tpu.memory_space<vmem>>, vector<32x16xbf16>
    %262 = arith.truncf %260 : vector<32x32xf32> to vector<32x32xbf16>
    %cst_111 = arith.constant dense<0.000000e+00> : vector<32x16xf32>
    %263 = tpu.matmul %262, %261, %cst_111 {dimension_numbers = #tpu.dot_dimension_numbers<[1], [0], [0], [1], [0, 0, 1, 1], [], []>} : vector<32x32xbf16>, vector<32x16xbf16>, vector<32x16xf32> -> vector<32x16xf32>
    %264 = vector.shape_cast %263 : vector<32x16xf32> to vector<1x32x16xf32>
    %265 = arith.truncf %264 : vector<1x32x16xf32> to vector<1x32x16xbf16>
    %266 = tpu.transpose %265, [0, 2, 1] : vector<1x32x16xbf16> -> vector<1x16x32xbf16>
    %267 = vector.shape_cast %266 : vector<1x16x32xbf16> to vector<16x32xbf16>
    %c0_112 = arith.constant 0 : index
    %c0_113 = arith.constant 0 : index
    %268 = vector.load %arg6[%c0_112, %c0_113] : memref<32x16xbf16, #tpu.memory_space<vmem>>, vector<32x16xbf16>
    %cst_114 = arith.constant dense<0.000000e+00> : vector<16x16xf32>
    %269 = tpu.matmul %267, %268, %cst_114 {dimension_numbers = #tpu.dot_dimension_numbers<[1], [0], [0], [1], [0, 0, 1, 1], [], []>} : vector<16x32xbf16>, vector<32x16xbf16>, vector<16x16xf32> -> vector<16x16xf32>
    %270 = vector.shape_cast %269 : vector<16x16xf32> to vector<1x16x16xf32>
    %271 = math.absf %270 : vector<1x16x16xf32>
    %cst_115 = arith.constant 2.000000e+00 : f32
    %272 = vector.broadcast %cst_115 : f32 to vector<1x16x16xf32>
    %273 = arith.mulf %272, %235 : vector<1x16x16xf32>
    %274 = arith.mulf %273, %259 : vector<1x16x16xf32>
    %cst_116 = arith.constant 3.000000e+01 : f32
    %275 = vector.broadcast %cst_116 : f32 to vector<1x16x16xf32>
    %276 = arith.addf %274, %275 : vector<1x16x16xf32>
    %277 = arith.mulf %235, %235 : vector<1x16x16xf32>
    %278 = arith.mulf %259, %259 : vector<1x16x16xf32>
    %279 = arith.addf %277, %278 : vector<1x16x16xf32>
    %cst_117 = arith.constant 3.000000e+01 : f32
    %280 = vector.broadcast %cst_117 : f32 to vector<1x16x16xf32>
    %281 = arith.addf %279, %280 : vector<1x16x16xf32>
    %282 = tpu.reciprocal %281 {approx = true} : vector<1x16x16xf32> -> vector<1x16x16xf32>
    %283 = arith.mulf %276, %282 : vector<1x16x16xf32>
    %cst_118 = arith.constant 2.000000e+00 : f32
    %284 = vector.broadcast %cst_118 : f32 to vector<1x16x16xf32>
    %285 = arith.mulf %284, %247 : vector<1x16x16xf32>
    %286 = arith.mulf %285, %271 : vector<1x16x16xf32>
    %cst_119 = arith.constant 3.000000e+01 : f32
    %287 = vector.broadcast %cst_119 : f32 to vector<1x16x16xf32>
    %288 = arith.addf %286, %287 : vector<1x16x16xf32>
    %289 = arith.mulf %247, %247 : vector<1x16x16xf32>
    %290 = arith.mulf %271, %271 : vector<1x16x16xf32>
    %291 = arith.addf %289, %290 : vector<1x16x16xf32>
    %cst_120 = arith.constant 3.000000e+01 : f32
    %292 = vector.broadcast %cst_120 : f32 to vector<1x16x16xf32>
    %293 = arith.addf %291, %292 : vector<1x16x16xf32>
    %294 = tpu.reciprocal %293 {approx = true} : vector<1x16x16xf32> -> vector<1x16x16xf32>
    %295 = arith.mulf %288, %294 : vector<1x16x16xf32>
    %296 = arith.addf %283, %295 : vector<1x16x16xf32>
    %cst_121 = arith.constant 5.000000e-01 : f32
    %297 = vector.broadcast %cst_121 : f32 to vector<1x16x16xf32>
    %298 = arith.mulf %297, %296 : vector<1x16x16xf32>
    %299 = arith.addf %195, %223 : vector<1x16x16xf32>
    %cst_122 = arith.constant 5.000000e-01 : f32
    %300 = vector.broadcast %cst_122 : f32 to vector<1x16x16xf32>
    %301 = arith.mulf %300, %299 : vector<1x16x16xf32>
    %cst_123 = arith.constant 0.000000e+00 : f32
    %302 = vector.broadcast %cst_123 : f32 to vector<1x1x1xf32>
    %cst_124 = arith.constant 0.000000e+00 : f32
    %303 = vector.broadcast %cst_124 : f32 to vector<1x1x1xf32>
    %cst_125 = arith.constant 2.100000e+00 : f32
    %304 = vector.broadcast %cst_125 : f32 to vector<1x16x16xf32>
    %305 = arith.mulf %304, %194 : vector<1x16x16xf32>
    %306 = math.tanh %305 : vector<1x16x16xf32>
    %cst_126 = arith.constant 1.000000e+00 : f32
    %307 = vector.broadcast %cst_126 : f32 to vector<1x16x16xf32>
    %308 = arith.addf %307, %306 : vector<1x16x16xf32>
    %cst_127 = arith.constant 5.000000e-01 : f32
    %309 = vector.broadcast %cst_127 : f32 to vector<1x16x16xf32>
    %310 = arith.mulf %309, %308 : vector<1x16x16xf32>
    %311 = arith.mulf %195, %310 : vector<1x16x16xf32>
    %cst_128 = arith.constant dense<0.000000e+00> : vector<1xf32>
    %312 = vector.multi_reduction <add>, %311, %cst_128 [1, 2] : vector<1x16x16xf32> to vector<1xf32>
    %313 = vector.shape_cast %312 : vector<1xf32> to vector<1x1x1xf32>
    %314 = arith.addf %302, %313 : vector<1x1x1xf32>
    %cst_129 = arith.constant dense<0.000000e+00> : vector<1xf32>
    %315 = vector.multi_reduction <add>, %195, %cst_129 [1, 2] : vector<1x16x16xf32> to vector<1xf32>
    %316 = vector.shape_cast %315 : vector<1xf32> to vector<1x1x1xf32>
    %317 = arith.addf %303, %316 : vector<1x1x1xf32>
    %cst_130 = arith.constant 2.100000e+00 : f32
    %318 = vector.broadcast %cst_130 : f32 to vector<1x16x16xf32>
    %319 = arith.mulf %318, %222 : vector<1x16x16xf32>
    %320 = math.tanh %319 : vector<1x16x16xf32>
    %cst_131 = arith.constant 1.000000e+00 : f32
    %321 = vector.broadcast %cst_131 : f32 to vector<1x16x16xf32>
    %322 = arith.addf %321, %320 : vector<1x16x16xf32>
    %cst_132 = arith.constant 5.000000e-01 : f32
    %323 = vector.broadcast %cst_132 : f32 to vector<1x16x16xf32>
    %324 = arith.mulf %323, %322 : vector<1x16x16xf32>
    %325 = arith.mulf %223, %324 : vector<1x16x16xf32>
    %cst_133 = arith.constant dense<0.000000e+00> : vector<1xf32>
    %326 = vector.multi_reduction <add>, %325, %cst_133 [1, 2] : vector<1x16x16xf32> to vector<1xf32>
    %327 = vector.shape_cast %326 : vector<1xf32> to vector<1x1x1xf32>
    %328 = arith.addf %314, %327 : vector<1x1x1xf32>
    %cst_134 = arith.constant dense<0.000000e+00> : vector<1xf32>
    %329 = vector.multi_reduction <add>, %223, %cst_134 [1, 2] : vector<1x16x16xf32> to vector<1xf32>
    %330 = vector.shape_cast %329 : vector<1xf32> to vector<1x1x1xf32>
    %331 = arith.addf %317, %330 : vector<1x1x1xf32>
    %cst_135 = arith.constant 2.100000e+00 : f32
    %332 = vector.broadcast %cst_135 : f32 to vector<1x16x16xf32>
    %333 = arith.mulf %332, %298 : vector<1x16x16xf32>
    %334 = math.tanh %333 : vector<1x16x16xf32>
    %cst_136 = arith.constant 1.000000e+00 : f32
    %335 = vector.broadcast %cst_136 : f32 to vector<1x16x16xf32>
    %336 = arith.addf %335, %334 : vector<1x16x16xf32>
    %cst_137 = arith.constant 5.000000e-01 : f32
    %337 = vector.broadcast %cst_137 : f32 to vector<1x16x16xf32>
    %338 = arith.mulf %337, %336 : vector<1x16x16xf32>
    %339 = arith.mulf %301, %338 : vector<1x16x16xf32>
    %cst_138 = arith.constant dense<0.000000e+00> : vector<1xf32>
    %340 = vector.multi_reduction <add>, %339, %cst_138 [1, 2] : vector<1x16x16xf32> to vector<1xf32>
    %341 = vector.shape_cast %340 : vector<1xf32> to vector<1x1x1xf32>
    %342 = arith.addf %328, %341 : vector<1x1x1xf32>
    %cst_139 = arith.constant dense<0.000000e+00> : vector<1xf32>
    %343 = vector.multi_reduction <add>, %301, %cst_139 [1, 2] : vector<1x16x16xf32> to vector<1xf32>
    %344 = vector.shape_cast %343 : vector<1xf32> to vector<1x1x1xf32>
    %345 = arith.addf %331, %344 : vector<1x1x1xf32>
    %cst_140 = arith.constant 9.99999996E-13 : f32
    %346 = vector.broadcast %cst_140 : f32 to vector<1x1x1xf32>
    %347 = arith.maximumf %345, %346 : vector<1x1x1xf32>
    %348 = arith.divf %342, %347 : vector<1x1x1xf32>
    %cst_141 = arith.constant 9.99999997E-7 : f32
    %cst_142 = arith.constant 0.999998986 : f32
    %349 = vector.broadcast %cst_141 : f32 to vector<1x1x1xf32>
    %350 = arith.maximumf %349, %348 : vector<1x1x1xf32>
    %351 = vector.broadcast %cst_142 : f32 to vector<1x1x1xf32>
    %352 = arith.minimumf %351, %350 : vector<1x1x1xf32>
    %cst_143 = arith.constant 1.000000e+00 : f32
    %353 = vector.broadcast %cst_143 : f32 to vector<1x1x1xf32>
    %354 = arith.subf %353, %352 : vector<1x1x1xf32>
    %355 = arith.divf %352, %354 : vector<1x1x1xf32>
    %356 = math.log %355 : vector<1x1x1xf32>
    %cst_144 = arith.constant 0.238095239 : f32
    %357 = vector.broadcast %cst_144 : f32 to vector<1x1x1xf32>
    %358 = arith.mulf %356, %357 : vector<1x1x1xf32>
    %359 = arith.mulf %358, %358 : vector<1x1x1xf32>
    %c0_145 = arith.constant 0 : index
    %c0_146 = arith.constant 0 : index
    %c0_147 = arith.constant 0 : index
    %360 = vector.load %arg7[%c0_145, %c0_146, %c0_147] : memref<1x1x1xf32, #tpu.memory_space<vmem>>, vector<1x1x1xf32>
    tpu.vector_store %arg7[%c0_145, %c0_146, %c0_147], %359 {strides = array<i32>} : memref<1x1x1xf32, #tpu.memory_space<vmem>>, vector<1x1x1xf32>,
    return
  }
  func.func @transform_0(%arg0: i32) -> (i32, i32, i32, i32) {
    %c0_i32 = arith.constant 0 : i32
    %c0_i32_0 = arith.constant 0 : i32
    %c0_i32_1 = arith.constant 0 : i32
    %c0_i32_2 = arith.constant 0 : i32
    return %arg0, %c0_i32, %c0_i32_0, %c0_i32_1 : i32, i32, i32, i32
  }
  func.func @transform_1(%arg0: i32) -> (i32, i32, i32, i32) {
    %c0_i32 = arith.constant 0 : i32
    %c0_i32_0 = arith.constant 0 : i32
    %c0_i32_1 = arith.constant 0 : i32
    %c0_i32_2 = arith.constant 0 : i32
    return %arg0, %c0_i32, %c0_i32_0, %c0_i32_1 : i32, i32, i32, i32
  }
  func.func @transform_2(%arg0: i32) -> (i32, i32) {
    %c0_i32 = arith.constant 0 : i32
    %c0_i32_0 = arith.constant 0 : i32
    %c0_i32_1 = arith.constant 0 : i32
    return %c0_i32, %c0_i32_0 : i32, i32
  }
  func.func @transform_3(%arg0: i32) -> (i32, i32, i32) {
    %c0_i32 = arith.constant 0 : i32
    %c0_i32_0 = arith.constant 0 : i32
    %c0_i32_1 = arith.constant 0 : i32
    %c0_i32_2 = arith.constant 0 : i32
    return %c0_i32, %c0_i32_0, %c0_i32_1 : i32, i32, i32
  }
  func.func @transform_4(%arg0: i32) -> (i32, i32) {
    %c0_i32 = arith.constant 0 : i32
    %c0_i32_0 = arith.constant 0 : i32
    %c0_i32_1 = arith.constant 0 : i32
    return %c0_i32, %c0_i32_0 : i32, i32
  }
  func.func @transform_5(%arg0: i32) -> (i32, i32) {
    %c0_i32 = arith.constant 0 : i32
    %c0_i32_0 = arith.constant 0 : i32
    %c0_i32_1 = arith.constant 0 : i32
    return %c0_i32, %c0_i32_0 : i32, i32
  }
  func.func @transform_6(%arg0: i32) -> (i32, i32, i32) {
    %c0_i32 = arith.constant 0 : i32
    %c0_i32_0 = arith.constant 0 : i32
    %c0_i32_1 = arith.constant 0 : i32
    return %arg0, %c0_i32, %c0_i32_0 : i32, i32, i32
  }
}

</mosaic_0001>

<bundles_post_ra>
// kernel: haarpsi_loss.1
= control target key start
LH: loop header
LB: loop body
LE: loop exit
PB: predicated region body
PF: predicated region fallthrough
CT: control target
= control target key end

     0   :  { %s2661_s0 = inlined_call_operand.hbm [shape: f32[2,3,32,32], index: 0, kind: input, shape index: {}]   ;;  %s2662_s1 = inlined_call_operand.hbm [shape: f32[2,3,32,32], index: 1, kind: input, shape index: {}]   ;;  %s2663_s2 = inlined_call_operand.hbm [shape: bf16[32,96], index: 2, kind: input, shape index: {}]   ;;  %s2664_s3 = inlined_call_operand.hbm [shape: bf16[6,32,16], index: 3, kind: input, shape index: {}]   ;;  %s2665_s4 = inlined_call_operand.hbm [shape: bf16[32,16], index: 4, kind: input, shape index: {}, may-alias: {4,5}]   ;;  %s2666_s5 = inlined_call_operand.hbm [shape: bf16[32,16], index: 5, kind: input, shape index: {}, may-alias: {4,5}]   ;;  %s2667_s6 = inlined_call_operand.vmem [shape: f32[2,1,1], index: 6, kind: output, shape index: {}]  }
   0x1   :  { %2668 = sst [smem:[#allocation17_spill]] %s2661_s0 }
   0x2   :  { %2669 = sst [smem:[#allocation18_spill]] %s2663_s2 }
   0x3   :  { %11 = vsyncpa [#allocation3], 0 }
   0x4   :  { %13 = vsyncpa [#allocation3 + $0x1], 0 }
   0x5   :  { %14 = vsyncpa [#allocation5], 0 }
   0x6   :  { %16 = vsyncpa [#allocation5 + $0x1], 0 }
   0x7   :  { %17 = vsyncpa [#allocation8], 0 }
   0x8   :  { %18 = vsyncpa [#allocation11], 0  ;;  %s2252_s21 = smov 0   ;;  %s2254_s22 = smov 0  }
   0x9   :  { %s2256_s23 = smov 0   ;;  %s2258_s24 = smov 0  }
   0xa LB: > { %s2271_s25 = sadd.s32 4294967295, %s2207_s24   ;;  %p44_p0 = scmp.ne.s32.totalorder %s2199_s22, %s2195_s21  ;;  %s2207_s24 = sphi %s2258_s24, %s2679_s24   ;;  %s2203_s23 = sphi %s2256_s23, %s2678_s23   ;;  %s2199_s22 = sphi %s2254_s22, %s2677_s22   ;;  %s2195_s21 = sphi %s2252_s21, %s2676_s21  }
   0xb   : > { %p45_p1 = scmp.eq.s32.totalorder %s2271_s25, 0  ;;  %p1687_p2 = scmp.ge.s32.totalorder %s2207_s24, 1 }
   0xc   : > { %p191_p3 = scmp.lt.s32.totalorder %s2207_s24, 3  ;;  %s2671_s2 = sld [smem:[#allocation18_spill]] }
   0xd   : > { %p2279_p4 = por %p45_p1, %p44_p0  ;;  %s2209_s7 = smov [#allocation6]  }
   0xe   : > { %p2286_p5 = pnand %p1687_p2, %p191_p3  ;;  %s204_s8 = sshll.u32 %s2209_s7, 4  ;;  %s205_s8 = int_to_ptr.vmem [resolvable:$true] %s204_s8 }
   0xf   : > { %s216_s12 = sshll.u32 %s2664_s3, 4  ;;  %s2210_s13 = smov 64   ;;  %s217_s12 = int_to_ptr.hbm [resolvable:$true] %s216_s12 }
  0x10   : > { %p1847_p6 = pneg %p2286_p5  ;;  %s2211_s14 = smov 4  }
  0x11   : > { %s2212_s15 = smov [#allocation7]   ;;  %s230_s19 = sshll.u32 %s2665_s4, 4  ;;  %s231_s19 = int_to_ptr.hbm [resolvable:$true] %s230_s19 }
  0x12   : > { %s202_s29 = sshll.u32 %s2671_s2, 4  ;;  %p2294_p7 = pnand %p1847_p6, %p45_p1  ;;  %s203_s29 = int_to_ptr.hbm [resolvable:$true] %s202_s29 }
  0x13   : > { %s218_s16 = sshll.u32 %s2212_s15, 4  ;;  %s244_s27 = sshll.u32 %s2666_s5, 4  ;;  %s219_s16 = int_to_ptr.vmem [resolvable:$true] %s218_s16  ;;  %s245_s27 = int_to_ptr.hbm [resolvable:$true] %s244_s27 }
  0x14   : > { %1850 = dma.hbm_to_vmem [thread:$0]  (!%p2294_p7), %s203_s29, 256, %s205_s8, [#allocation5], %s2210_s13, %s2210_s13, %s2211_s14  }
  0x15   : > { %1853 = dma.hbm_to_vmem [thread:$0]  (!%p2294_p7), %s217_s12, 1536, %s219_s16, [#allocation8], %s2210_s13, %s2210_s13, %s2211_s14  }
  0x16   : > { %s2213_s28 = smov [#allocation9]   ;;  %s2214_s7 = smov [#allocation10]  }
  0x17   : > { %s232_s29 = sshll.u32 %s2213_s28, 4  ;;  %s246_s8 = sshll.u32 %s2214_s7, 4  ;;  %s233_s29 = int_to_ptr.vmem [resolvable:$true] %s232_s29  ;;  %s247_s8 = int_to_ptr.vmem [resolvable:$true] %s246_s8 }
  0x18   : > { %1856 = dma.hbm_to_vmem [thread:$0]  (!%p2294_p7), %s231_s19, 256, %s233_s29, [#allocation8], %s2210_s13, %s2210_s13, %s2211_s14  }
  0x19   : > { %1859 = dma.hbm_to_vmem [thread:$0]  (!%p2294_p7), %s245_s27, 256, %s247_s8, [#allocation11], %s2210_s13, %s2210_s13, %s2211_s14  }
  0x1a   : > { %s2316_s10 = sadd.s32 1, %s2207_s24   ;;  %s31_s11 = sadd.s32 1, %s2203_s23 }
  0x1b   : > { %s28_s12 = ssub.s32 %s2207_s24, %s2316_s10  ;;  %p38_p8 = scmp.ne.s32.totalorder %s2203_s23, %s2199_s22 }
  0x1c   : > { %p29_p9 = scmp.eq.s32.totalorder %s28_s12, 0  ;;  %p39_p10 = scmp.eq.s32.totalorder %s2207_s24, 0 }
  0x1d   : > { %p1871_p11 = scmp.lt.s32.totalorder %s2207_s24, 2  ;;  %s260_s15 = sand.u32 1, %s2203_s23  }
  0x1e   : > { %s2327_s16 = scalar_select %p29_p9, %s2203_s23, %s31_s11  }
  0x1f   : > { %p40_p12 = por %p39_p10, %p38_p8  ;;  %s2329_s17 = smul.u32 96, %s260_s15 }
  0x20   : > { %s1823_s18 = smul.u32 96, %s2207_s24  ;;  %s2675_s0 = sld [smem:[#allocation17_spill]] }
  0x21   : > { %p2332_p13 = pnand %p1871_p11, %p40_p12  ;;  %s264_s20 = scalar_lea.vmem [#allocation2], %s2329_s17 }
  0x22   : > { %s272_s21 = sshll.u32 %s264_s20, 4  ;;  %s261_s28 = scalar_lea.sflag [#allocation3], %s260_s15  ;;  %s273_s21 = int_to_ptr.vmem [resolvable:$true] %s272_s21 }
  0x23   : > { %p2101_p2 = pneg %p2332_p13 }
  0x26   : > { %s269_s19 = scalar_lea.hbm %s2675_s0, %s1823_s18  ;;  %s2104_s12 = scalar_lea.hbm %s2675_s0, 192 }
  0x27   : > { %s270_s27 = sshll.u32 %s269_s19, 4  ;;  %s271_s27 = int_to_ptr.hbm [resolvable:$true] %s270_s27 }
  0x28   : > { %s2097_s29 = sshra.s32 %s271_s27, 4  ;;  %s2098_s29 = int_to_ptr.hbm [resolvable:$true] %s2097_s29 }
  0x29   : > { %s2099_s7 = scalar_lea.hbm %s2098_s29, 96  ;;  %p2105_p7 = scmp.lt.s32.totalorder %s2098_s29, %s2675_s0 }
  0x2a   : > { %p2100_p0 = scmp.ne.s32.totalorder %s2098_s29, %s2099_s7  ;;  %p2106_p8 = scmp.lt.s32.totalorder %s2104_s12, %s2099_s7 }
  0x2c   : > { %p2102_p3 = pnand %p2101_p2, %p2100_p0  ;;  %p2107_p9 = por %p2106_p8, %p2105_p7 }
  0x2e   : > { %p2103_p6 = pneg %p2102_p3 }
  0x30   : > { %p2108_p10 = pnand %p2107_p9, %p2103_p6 }
  0x32   : > { %2111 = shalt.err (!%p2108_p10)
}
  0x33   : > { %s2215_s15 = smov 128   ;;  %s2216_s19 = smov 8  }
  0x34   : > { %1863 = dma.hbm_to_vmem [thread:$0]  (!%p2332_p13), %s271_s27, 1536, %s273_s21, %s261_s28, %s2215_s15, %s2215_s15, %s2216_s19  }
  0x35   : > { %s282_s20 = sand.u32 1, %s2207_s24   ;;  %s291_s13 = scalar_lea.hbm %s2662_s1, %s1823_s18 }
  0x36   : > { %s292_s29 = sshll.u32 %s291_s13, 4  ;;  %s286_s7 = scalar_lea.vmem [#allocation4], %s2329_s17  ;;  %s293_s29 = int_to_ptr.hbm [resolvable:$true] %s292_s29 }
  0x37   : > { %s294_s12 = sshll.u32 %s286_s7, 4  ;;  %s283_s14 = scalar_lea.sflag [#allocation5], %s282_s20  ;;  %s295_s12 = int_to_ptr.vmem [resolvable:$true] %s294_s12 }
  0x38   : > { %s2127_s0 = sshra.s32 %s293_s29, 4  ;;  %s2134_s27 = scalar_lea.hbm %s2662_s1, 192  ;;  %s2128_s0 = int_to_ptr.hbm [resolvable:$true] %s2127_s0 }
  0x39   : > { %s2129_s2 = scalar_lea.hbm %s2128_s0, 96  ;;  %p2135_p3 = scmp.lt.s32.totalorder %s2128_s0, %s2662_s1 }
  0x3a   : > { %p2130_p11 = scmp.ne.s32.totalorder %s2128_s0, %s2129_s2  ;;  %p2136_p6 = scmp.lt.s32.totalorder %s2134_s27, %s2129_s2 }
  0x3c   : > { %p2132_p12 = pnand %p2130_p11, %p2101_p2  ;;  %p2137_p7 = por %p2136_p6, %p2135_p3 }
  0x3e   : > { %p2133_p0 = pneg %p2132_p12 }
  0x40   : > { %p2138_p8 = pnand %p2137_p7, %p2133_p0 }
  0x42   : > { %2141 = shalt.err (!%p2138_p8)
}
  0x43   : > { %1866 = dma.hbm_to_vmem [thread:$0]  (!%p2332_p13), %s293_s29, 1536, %s295_s12, %s283_s14, %s2215_s15, %s2215_s15, %s2216_s19  }
  0x44   : > { %306 = sbr.rel (%p2286_p5) target bundleno = 1205 (0x4b5), region = 44  ;;  %s308_s17 = sand.u32 (!%p2286_p5), 1, %s2199_s22  }
  0x45   : > { %s1826_s20 = smul.u32 (!%p2286_p5), 96, %s308_s17  ;;  %s309_s8 = scalar_lea.sflag (!%p2286_p5), [#allocation3], %s308_s17 }
  0x47   : > { %s2376_s11 = scalar_lea.vmem (!%p2286_p5), [#allocation2], %s1826_s20 }
  0x49   : > { %2174 = dma.done.wait (%p2279_p4), %s309_s8, 1536  }
  0x4a   : > { %2176 = vsyncadd (%p2279_p4), %s309_s8, 4294965760  ;;  %s318_s0 = sand.u32 1, %s2271_s25   ;;  %s2383_s9 = scalar_lea.vmem [#allocation4], %s1826_s20 }
  0x4b   : > { %s319_s2 = scalar_lea.sflag [#allocation5], %s318_s0 }
  0x4c   : > { %2178 = dma.done.wait (%p2279_p4), %s319_s2, 1536  }
  0x4d   : > { %2180 = vsyncadd (%p2279_p4), %s319_s2, 4294965760 }
  0x4e   : > { %2182 = dma.done.wait (%p45_p1), [#allocation5], 256  }
  0x4f   : > { %2184 = vsyncadd (%p45_p1), [#allocation5], 4294967040 }
  0x50   : > { %2186 = dma.done.wait (%p45_p1), [#allocation8], 1792  }
  0x51   : > { %2188 = vsyncadd (%p45_p1), [#allocation8], 4294965504 }
  0x52   : > { %2190 = dma.done.wait (%p45_p1), [#allocation11], 256  }
  0x53   : > { %2192 = vsyncadd (%p45_p1), [#allocation11], 4294967040  ;;  %v1803_v0 = vld [vmem:[#allocation6 + $0x8] sm:$0xff]  ;;  %v1802_v1 = vld [vmem:[#allocation6] sm:$0xff]  ;;  %vm589_vm0 = vcmask 261120   ;;  %vm1433_vm1 = vcmask 130048  }
  0x54   : > { %v379_v2 = vld [vmem:[%s2376_s11] sm:$0xff]  ;;  %v380_v3 = vld [vmem:[%s2376_s11 + $0x8] sm:$0xff]  ;;  %602 = vmatpush.bf16.msra.mxu0 %v1803_v0  ;;  %1820 = vmatpush.bf16.msra.mxu3 %v1803_v0  ;;  %v381_v47 = vld [vmem:[%s2376_s11 + $0x10] sm:$0xff]  ;;  %p375_p1 = scmp.lt.s32.totalorder %s2271_s25, 1  ;;  %vm1564_vm10 = vcmask 0  }
  0x55   : > { %v383_v4 = vld [vmem:[%s2376_s11 + $0x20] sm:$0xff]  ;;  %v384_v5 = vld [vmem:[%s2376_s11 + $0x28] sm:$0xff]  ;;  %v391_v6 = vadd.f32 1.0, %v379_v2  ;;  %v392_v9 = vadd.f32 1.0, %v380_v3  ;;  %v382_v48 = vld [vmem:[%s2376_s11 + $0x18] sm:$0xff]  ;;  %v393_v59 = vadd.f32 1.0, %v381_v47 }
  0x56   : > { %v387_v7 = vld [vmem:[%s2376_s11 + $0x40] sm:$0xff]  ;;  %v388_v8 = vld [vmem:[%s2376_s11 + $0x48] sm:$0xff]  ;;  %v395_v10 = vadd.f32 1.0, %v383_v4  ;;  %v396_v11 = vadd.f32 1.0, %v384_v5  ;;  %v385_v49 = vld [vmem:[%s2376_s11 + $0x30] sm:$0xff]  ;;  %v394_v60 = vadd.f32 1.0, %v382_v48 }
  0x57   : > { %v475_v12 = vld [vmem:[%s2383_s9] sm:$0xff]  ;;  %v399_v13 = vadd.f32 1.0, %v387_v7  ;;  %v400_v14 = vadd.f32 1.0, %v388_v8  ;;  %v2408_v15 = vmul.f32 127.5, %v391_v6  ;;  %v476_v16 = vld [vmem:[%s2383_s9 + $0x8] sm:$0xff]  ;;  %v2412_v18 = vmul.f32 127.5, %v392_v9 }
  0x58   : > { %v479_v17 = vld [vmem:[%s2383_s9 + $0x20] sm:$0xff]  ;;  %v2414_v19 = vmul.f32 127.5, %v395_v10  ;;  %v2416_v20 = vmul.f32 127.5, %v396_v11  ;;  %v480_v21 = vld [vmem:[%s2383_s9 + $0x28] sm:$0xff]  ;;  %v487_v23 = vadd.f32 1.0, %v475_v12  ;;  %v488_v28 = vadd.f32 1.0, %v476_v16  ;;  %603 = vmatpush.bf16.msra.mxu0 %v1802_v1  ;;  %1821 = vmatpush.bf16.msra.mxu3 %v1802_v1 }
  0x59   : > { %v483_v22 = vld [vmem:[%s2383_s9 + $0x40] sm:$0xff]  ;;  %v2420_v24 = vmul.f32 127.5, %v399_v13  ;;  %v2422_v25 = vmul.f32 127.5, %v400_v14  ;;  %v415_v26 = vmul.f32 0.299, %v2408_v15  ;;  %v484_v27 = vld [vmem:[%s2383_s9 + $0x48] sm:$0xff] }
  0x5a   : > { %v416_v29 = vmul.f32 0.299, %v2412_v18  ;;  %v419_v30 = vmul.f32 0.587, %v2414_v19  ;;  %v420_v31 = vmul.f32 0.587, %v2416_v20 }
  0x5b   : > { %v427_v32 = vmul.f32 0.114, %v2420_v24  ;;  %v428_v33 = vmul.f32 0.114, %v2422_v25  ;;  %v491_v34 = vadd.f32 1.0, %v479_v17  ;;  %v492_v35 = vadd.f32 1.0, %v480_v21 }
  0x5c   : > { %862 = vmatpush.bf16.msrb.mxu0 %v1803_v0  ;;  %v423_v36 = vadd.f32 %v419_v30, %v415_v26  ;;  %v424_v37 = vadd.f32 %v420_v31, %v416_v29  ;;  %v495_v38 = vadd.f32 1.0, %v483_v22  ;;  %v496_v39 = vadd.f32 1.0, %v484_v27  ;;  %v386_v51 = vld [vmem:[%s2376_s11 + $0x38] sm:$0xff]  ;;  %v389_v52 = vld [vmem:[%s2376_s11 + $0x50] sm:$0xff]  ;;  %s2681_s25 = smov (!%p375_p1, %s2271_s25), 1 }
  0x5d   : > { %v2431_v40 = vmul.f32 127.5, %v487_v23  ;;  %v2433_v41 = vmul.f32 127.5, %v488_v28  ;;  %v2435_v42 = vmul.f32 127.5, %v491_v34  ;;  %v2437_v43 = vmul.f32 127.5, %v492_v35  ;;  %v390_v53 = vld [vmem:[%s2376_s11 + $0x58] sm:$0xff]  ;;  %v477_v11 = vld [vmem:[%s2383_s9 + $0x10] sm:$0xff]  ;;  %s377_s15 = scalar_lea.vmem %s2667_s6, %s2681_s25 }
  0x5e   : > { %v431_v44 = vadd.f32 %v427_v32, %v423_v36  ;;  %v432_v45 = vadd.f32 %v428_v33, %v424_v37  ;;  %v2439_v46 = vmul.f32 127.5, %v495_v38  ;;  %v2444_v50 = vmul.f32 127.5, %v496_v39  ;;  %v2455_v2 = vld [vmem:[#allocation9 + $0x8] sm:$0xff]  ;;  %v2472_v12 = vld [vmem:[#allocation9] sm:$0xff] }
  0x5f   : > { %v511_v55 = vmul.f32 0.299, %v2431_v40  ;;  %v512_v56 = vmul.f32 0.299, %v2433_v41  ;;  %v515_v57 = vmul.f32 0.587, %v2435_v42 }
  0x60   : > { %863 = vmatpush.bf16.msrb.mxu0 %v1802_v1  ;;  %v575_v54 = vpack.c.bf16 %v432_v45, %v431_v44  ;;  %v516_v58 = vmul.f32 0.587, %v2437_v43  ;;  %v397_v61 = vadd.f32 1.0, %v385_v49  ;;  %v523_v62 = vmul.f32 0.114, %v2439_v46  ;;  %v478_v27 = vld [vmem:[%s2383_s9 + $0x18] sm:$0xff] }
  0x61   : > { %v398_v63 = vadd.f32 1.0, %v386_v51  ;;  %v401_v0 = vadd.f32 1.0, %v389_v52  ;;  %v402_v1 = vadd.f32 1.0, %v390_v53  ;;  %v524_v3 = vmul.f32 0.114, %v2444_v50  ;;  %v481_v28 = vld [vmem:[%s2383_s9 + $0x30] sm:$0xff] }
  0x62   : > { %1708 = vmatmul.msk.bf16.vlgmr.msra.gmra.mxu0 %vm589_vm0, %v575_v54  ;;  %v2458_v4 = vmul.f32 127.5, %v393_v59  ;;  %v2460_v5 = vmul.f32 127.5, %v394_v60  ;;  %v2462_v6 = vmul.f32 127.5, %v397_v61  ;;  %v519_v7 = vadd.f32 %v515_v57, %v511_v55  ;;  %v482_v29 = vld [vmem:[%s2383_s9 + $0x38] sm:$0xff]  ;;  %v485_v36 = vld [vmem:[%s2383_s9 + $0x50] sm:$0xff] }
  0x63   : > { %v2464_v8 = vmul.f32 127.5, %v398_v63  ;;  %v2466_v9 = vmul.f32 127.5, %v401_v0  ;;  %v2468_v10 = vmul.f32 127.5, %v402_v1  ;;  %v520_v13 = vadd.f32 %v516_v58, %v512_v56  ;;  %v486_v37 = vld [vmem:[%s2383_s9 + $0x58] sm:$0xff] }
  0x64   : > { %1121 = vmatpush.bf16.msra.mxu0 %v2455_v2  ;;  %v417_v14 = vmul.f32 0.299, %v2458_v4  ;;  %v418_v16 = vmul.f32 0.299, %v2460_v5  ;;  %v421_v17 = vmul.f32 0.587, %v2462_v6  ;;  %v527_v31 = vadd.f32 %v523_v62, %v519_v7 }
  0x65   : > { %v422_v21 = vmul.f32 0.587, %v2464_v8  ;;  %v429_v22 = vmul.f32 0.114, %v2466_v9  ;;  %v430_v23 = vmul.f32 0.114, %v2468_v10  ;;  %v528_v32 = vadd.f32 %v524_v3, %v520_v13 }
  0x66   : > { %v425_v26 = vadd.f32 %v421_v17, %v417_v14  ;;  %v489_v34 = vadd.f32 1.0, %v477_v11  ;;  %v490_v38 = vadd.f32 1.0, %v478_v27  ;;  %v493_v39 = vadd.f32 1.0, %v481_v28 }
  0x67   : > { %v426_v30 = vadd.f32 %v422_v21, %v418_v16  ;;  %v494_v44 = vadd.f32 1.0, %v482_v29  ;;  %v497_v47 = vadd.f32 1.0, %v485_v36  ;;  %v498_v48 = vadd.f32 1.0, %v486_v37 }
  0x68   : > { %1122 = vmatpush.bf16.msra.mxu0 %v2472_v12  ;;  %v433_v33 = vadd.f32 %v429_v22, %v425_v26  ;;  %v2486_v49 = vmul.f32 127.5, %v489_v34  ;;  %v848_v51 = vpack.c.bf16 %v528_v32, %v527_v31  ;;  %v2489_v52 = vmul.f32 127.5, %v490_v38 }
  0x69   : > { %v434_v35 = vadd.f32 %v430_v23, %v426_v30  ;;  %v2491_v53 = vmul.f32 127.5, %v493_v39  ;;  %v2493_v54 = vmul.f32 127.5, %v494_v44  ;;  %v2495_v55 = vmul.f32 127.5, %v497_v47 }
  0x6a   : > { %v2497_v56 = vmul.f32 127.5, %v498_v48  ;;  %v513_v57 = vmul.f32 0.299, %v2486_v49  ;;  %v514_v58 = vmul.f32 0.299, %v2489_v52 }
  0x6b   : > { %v576_v45 = vpack.c.bf16 %v434_v35, %v433_v33  ;;  %v517_v59 = vmul.f32 0.587, %v2491_v53  ;;  %v518_v60 = vmul.f32 0.587, %v2493_v54  ;;  %v525_v63 = vmul.f32 0.114, %v2495_v55 }
  0x6c   : > { %v526_v0 = vmul.f32 0.114, %v2497_v56  ;;  %v435_v11 = vmul.f32 0.596, %v2408_v15  ;;  %v436_v13 = vmul.f32 0.596, %v2412_v18 }
  0x6d   : > { %1709 = vmatmul.msk.bf16.vlgmr.msra.gmra.mxu3 %vm589_vm0, %v576_v45  ;;  %v521_v61 = vadd.f32 %v517_v59, %v513_v57  ;;  %v522_v62 = vadd.f32 %v518_v60, %v514_v58  ;;  %v439_v14 = vmul.f32 0.274, %v2414_v19  ;;  %v440_v16 = vmul.f32 0.274, %v2416_v20 }
  0x6e   : > { %v447_v22 = vmul.f32 0.322, %v2420_v24  ;;  %v448_v23 = vmul.f32 0.322, %v2422_v25  ;;  %v437_v29 = vmul.f32 0.596, %v2458_v4 }
  0x6f   : > { %v529_v1 = vadd.f32 %v525_v63, %v521_v61  ;;  %v530_v3 = vadd.f32 %v526_v0, %v522_v62  ;;  %v443_v17 = vsub.f32 %v435_v11, %v439_v14  ;;  %v444_v21 = vsub.f32 %v436_v13, %v440_v16 }
  0x70   : > { %v438_v30 = vmul.f32 0.596, %v2460_v5  ;;  %v441_v31 = vmul.f32 0.274, %v2462_v6  ;;  %v442_v32 = vmul.f32 0.274, %v2464_v8 }
  0x71   : > { %v849_v7 = vpack.c.bf16 %v530_v3, %v529_v1  ;;  %v451_v26 = vsub.f32 %v443_v17, %v447_v22  ;;  %v452_v27 = vsub.f32 %v444_v21, %v448_v23  ;;  %v449_v34 = vmul.f32 0.322, %v2466_v9  ;;  %v1804_v21 = vld [vmem:[#allocation7] sm:$0xff] }
  0x72   : > { %1764 = vmatmul.msk.bf16.vlgmr.msrb.gmra.mxu0 %vm589_vm0, %v848_v51  ;;  %v445_v33 = vsub.f32 %v437_v29, %v441_v31  ;;  %v450_v35 = vmul.f32 0.322, %v2468_v10  ;;  %v446_v36 = vsub.f32 %v438_v30, %v442_v32  ;;  %v551_v11 = vmul.f32 0.211, %v2431_v40 }
  0x73   : > { %1329 = vmatpush.bf16.msrb.mxu0 %v2455_v2  ;;  %v1095_v28 = vpack.c.bf16 %v452_v27, %v451_v26  ;;  %v552_v13 = vmul.f32 0.211, %v2433_v41  ;;  %v555_v14 = vmul.f32 0.523, %v2435_v42  ;;  %v556_v16 = vmul.f32 0.523, %v2437_v43 }
  0x74   : > { %v453_v37 = vsub.f32 %v445_v33, %v449_v34  ;;  %v454_v38 = vsub.f32 %v446_v36, %v450_v35  ;;  %v563_v17 = vmul.f32 0.312, %v2439_v46  ;;  %v564_v22 = vmul.f32 0.312, %v2444_v50  ;;  %v1807_v36 = vld [vmem:[#allocation7 + $0x18] sm:$0xff] }
  0x75   : > { %v559_v23 = vsub.f32 %v551_v11, %v555_v14  ;;  %v560_v26 = vsub.f32 %v552_v13, %v556_v16  ;;  %v553_v33 = vmul.f32 0.211, %v2486_v49  ;;  %v554_v34 = vmul.f32 0.211, %v2489_v52  ;;  %694 = vmatpush.bf16.msra.mxu2 %v1807_v36  ;;  %v1812_v11 = vld [vmem:[#allocation7 + $0x40] sm:$0xff]  ;;  %v1815_v16 = vld [vmem:[#allocation7 + $0x58] sm:$0xff] }
  0x76   : > { %v1096_v39 = vpack.c.bf16 %v454_v38, %v453_v37  ;;  %v557_v35 = vmul.f32 0.523, %v2491_v53  ;;  %v558_v37 = vmul.f32 0.523, %v2493_v54  ;;  %v565_v38 = vmul.f32 0.312, %v2495_v55 }
  0x77   : > { %1330 = vmatpush.bf16.msrb.mxu0 %v2472_v12  ;;  %v567_v27 = vadd.f32 %v563_v17, %v559_v23  ;;  %v1814_v17 = vld [vmem:[#allocation7 + $0x50] sm:$0xff] }
  0x82   : > { %1765 = vmatmul.msk.bf16.gmra.mxu0 %vm589_vm0, %v849_v7  ;;  %v1805_v7 = vld [vmem:[#allocation7 + $0x8] sm:$0xff] }
  0x83   : > { %658 = vmatpush.bf16.msra.mxu1 %v1805_v7 }
  0x87   : > { %659 = vmatpush.bf16.msra.mxu1 %v1804_v21 }
  0x92   : > { %1780 = vmatmul.msk.bf16.vlgmr.msra.gmra.mxu0 %vm589_vm0, %v1095_v28  ;;  %v568_v28 = vadd.f32 %v564_v22, %v560_v26  ;;  %v2541_v22 = vld [vmem:[#allocation10 + $0x8] sm:$0xff]  ;;  %v2546_v26 = vld [vmem:[#allocation10] sm:$0xff] }
  0x94   : > { %v1315_v29 = vpack.c.bf16 %v568_v28, %v567_v27 }
  0xa2   : > { %1781 = vmatmul.msk.bf16.gmra.mxu0 %vm589_vm0, %v1096_v39  ;;  %v561_v39 = vsub.f32 %v553_v33, %v557_v35  ;;  %v459_v33 = vmul.f32 0.523, %v2414_v19  ;;  %v535_v35 = vmul.f32 0.274, %v2435_v42  ;;  %v544_v42 = vmul.f32 0.322, %v2444_v50 }
  0xa3   : > { %v462_v50 = vmul.f32 0.523, %v2464_v8  ;;  %v545_v8 = vmul.f32 0.322, %v2495_v55 }
  0xb2   : > { %1797 = vmatmul.msk.bf16.vlgmr.msrb.gmra.mxu0 %vm589_vm0, %v1315_v29 }
  0xdf   : > { %v605_v44 = vpop.f32.mrf.mxu0 }
  0xe7   : > { %v607_v45 = vpop.f32.mrf.mxu0 }
  0xe8   : > { %v615_v51 = vpack.c.bf16 %v607_v45, %v605_v44  ;;  %v566_v44 = vmul.f32 0.312, %v2497_v56  ;;  %v1806_v45 = vld [vmem:[#allocation7 + $0x10] sm:$0xff] }
  0xe9   : > { %695 = vmatpush.bf16.msra.mxu2 %v1806_v45 }
  0xef   : > { %v865_v47 = vpop.f32.mrf.mxu0 }
  0xf0   : > { %v610_v58 = vpop.f32.mrf.mxu3 }
  0xf7   : > { %v867_v48 = vpop.f32.mrf.mxu0 }
  0xf8   : > { %v875_v57 = vpack.c.bf16 %v867_v48, %v865_v47  ;;  %v612_v60 = vpop.f32.mrf.mxu3  ;;  %v562_v47 = vsub.f32 %v554_v34, %v558_v37  ;;  %v569_v48 = vadd.f32 %v565_v38, %v561_v39  ;;  %v531_v34 = vmul.f32 0.596, %v2431_v40 }
  0xf9   : > { %v616_v62 = vpack.c.bf16 %v612_v60, %v610_v58  ;;  %v1809_v58 = vld [vmem:[#allocation7 + $0x28] sm:$0xff]  ;;  %v468_v40 = vmul.f32 0.312, %v2422_v25  ;;  %v457_v25 = vmul.f32 0.211, %v2458_v4 }
  0xfa   : > { %1917 = vxpose.binary.xlu0.c.b16.start [1/4] (short) (narrow) %v875_v57, %v615_v51, 96  ;;  %v570_v51 = vadd.f32 %v566_v44, %v562_v47  ;;  %v539_v38 = vsub.f32 %v531_v34, %v535_v35  ;;  %v538_v4 = vmul.f32 0.274, %v2493_v54 }
  0xfb   : > { %730 = vmatpush.bf16.msrb.mxu3 %v1809_v58 }
  0xfc   : > { %v1316_v57 = vpack.c.bf16 %v570_v51, %v569_v48 }
  0xfe   : > { %1798 = vmatmul.msk.bf16.gmra.mxu0 %vm589_vm0, %v1316_v57 }
  0xff   : > { %v870_v59 = vpop.f32.mrf.mxu0 }
 0x107   : > { %v872_v61 = vpop.f32.mrf.mxu0 }
 0x108   : > { %v876_v63 = vpack.c.bf16 %v872_v61, %v870_v59  ;;  %v1808_v59 = vld [vmem:[#allocation7 + $0x20] sm:$0xff]  ;;  %v1811_v61 = vld [vmem:[#allocation7 + $0x38] sm:$0xff] }
 0x109   : > { %731 = vmatpush.bf16.msrb.mxu3 %v1808_v59  ;;  %766 = vmatpush.bf16.msrb.mxu1 %v1811_v61 }
 0x10a   : > { %1918 = vxpose.binary.xlu0.c.b16.end [2/4] (short) (narrow) %v876_v63, %v616_v62, 96  ;;  %v1810_v63 = vld [vmem:[#allocation7 + $0x30] sm:$0xff] }
 0x10d   : > { %767 = vmatpush.bf16.msrb.mxu1 %v1810_v63  ;;  %838 = vmatpush.bf16.msra.mxu3 %v1815_v16 }
 0x10f   : > { %v1124_v0 = vpop.f32.mrf.mxu0 }
 0x111   : > { %839 = vmatpush.bf16.msra.mxu3 %v1814_v17 }
 0x117   : > { %v1126_v1 = vpop.f32.mrf.mxu0 }
 0x118   : > { %v1134_v3 = vpack.c.bf16 %v1126_v1, %v1124_v0  ;;  %v1813_v1 = vld [vmem:[#allocation7 + $0x48] sm:$0xff] }
 0x119   : > { %802 = vmatpush.bf16.msrb.mxu2 %v1813_v1 }
 0x11a   : > { %1136 = vxpose.xlu1.c.b16.start [1/2] (short) (narrow) %v1134_v3, 16 }
 0x11d   : > { %803 = vmatpush.bf16.msrb.mxu2 %v1812_v11 }
 0x11f   : > { %v1129_v30 = vpop.f32.mrf.mxu0 }
 0x127   : > { %v1131_v31 = vpop.f32.mrf.mxu0 }
 0x128   : > { %v1135_v32 = vpack.c.bf16 %v1131_v31, %v1129_v30  ;;  %v455_v31 = vmul.f32 0.211, %v2408_v15  ;;  %v536_v15 = vmul.f32 0.274, %v2437_v43 }
 0x12a   : > { %1137 = vxpose.xlu1.c.b16.end [2/2] (short) (narrow) %v1135_v32, 16  ;;  %v456_v32 = vmul.f32 0.211, %v2412_v18  ;;  %v463_v37 = vsub.f32 %v455_v31, %v459_v33 }
 0x12f   : > { %v1332_v29 = vpop.f32.mrf.mxu0 }
 0x1a6   : > { %v1919_v60 = vpop.trf.xlu0 }
 0x1a7   : > { %1718 = vmatmul.msk.bf16.vlgmr.msra.gmra.mxu1 %vm589_vm0, %v1919_v60  ;;  %v534_v60 = vmul.f32 0.596, %v2489_v52 }
 0x1a8   : > { %902 = vmatpush.bf16.msra.mxu1 %v1805_v7 }
 0x1ac   : > { %903 = vmatpush.bf16.msra.mxu1 %v1804_v21 }
 0x1ae   : > { %v1920_v62 = vpop.trf.xlu0 }
 0x1b6   : > { %v1921_v0 = vpop.trf.xlu0 }
 0x1b7   : > { %1727 = vmatmul.msk.bf16.vlgmr.msra.gmra.mxu2 %vm589_vm0, %v1921_v0 }
 0x1b8   : > { %921 = vmatpush.bf16.msra.mxu2 %v1807_v36  ;;  %v1334_v36 = vpop.f32.mrf.mxu0 }
 0x1b9   : > { %v1342_v18 = vpack.c.bf16 %v1334_v36, %v1332_v29 }
 0x1bb   : > { %1344 = vxpose.xlu0.c.b16.start [1/2] (short) (narrow) %v1342_v18, 16 }
 0x1bc   : > { %922 = vmatpush.bf16.msra.mxu2 %v1806_v45 }
 0x1be   : > { %v1922_v3 = vpop.trf.xlu0 }
 0x1c0   : > { %v1337_v51 = vpop.f32.mrf.mxu0 }
 0x1c6   : > { %v1923_v13 = vpop.trf.xlu0  ;;  %v1144_v30 = vpop.trf.xlu1 }
 0x1c7   : > { %1736 = vmatmul.msk.bf16.vlgmr.msrb.gmra.mxu3 %vm589_vm0, %v1923_v13 }
 0x1c8   : > { %940 = vmatpush.bf16.msrb.mxu3 %v1809_v58  ;;  %v461_v58 = vmul.f32 0.523, %v2462_v6  ;;  %v1339_v0 = vpop.f32.mrf.mxu0 }
 0x1c9   : > { %v1343_v52 = vpack.c.bf16 %v1339_v0, %v1337_v51 }
 0x1ca   : > { %v465_v6 = vsub.f32 %v457_v25, %v461_v58 }
 0x1cb   : > { %1345 = vxpose.xlu0.c.b16.end [2/2] (short) (narrow) %v1343_v52, 16 }
 0x1cc   : > { %941 = vmatpush.bf16.msrb.mxu3 %v1808_v59  ;;  %v533_v59 = vmul.f32 0.596, %v2486_v49 }
 0x1ce   : > { %v1924_v14 = vpop.trf.xlu0 }
 0x1d6   : > { %v1925_v7 = vpop.trf.xlu0 }
 0x1d7   : > { %1745 = vmatmul.msk.bf16.vlgmr.msrb.gmra.mxu1 %vm589_vm0, %v1925_v7 }
 0x1d8   : > { %959 = vmatpush.bf16.msrb.mxu1 %v1811_v61  ;;  %v537_v61 = vmul.f32 0.274, %v2491_v53 }
 0x1da   : > { %v541_v49 = vsub.f32 %v533_v59, %v537_v61 }
 0x1dc   : > { %960 = vmatpush.bf16.msrb.mxu1 %v1810_v63  ;;  %v469_v63 = vmul.f32 0.312, %v2466_v9 }
 0x1de   : > { %v1926_v21 = vpop.trf.xlu0  ;;  %v473_v53 = vadd.f32 %v469_v63, %v465_v6 }
 0x1e6   : > { %v1927_v23 = vpop.trf.xlu0 }
 0x1e7   : > { %1754 = vmatmul.msk.bf16.vlgmr.msrb.gmra.mxu2 %vm589_vm0, %v1927_v23  ;;  %1766 = vmatmul.msk.bf16.vlgmr.msra.gmra.mxu1 %vm589_vm0, %v1920_v62 }
 0x1e8   : > { %978 = vmatpush.bf16.msrb.mxu2 %v1813_v1  ;;  %1177 = vmatpush.bf16.msra.mxu1 %v2541_v22  ;;  %v542_v1 = vsub.f32 %v534_v60, %v538_v4 }
 0x1ec   : > { %979 = vmatpush.bf16.msrb.mxu2 %v1812_v11  ;;  %1178 = vmatpush.bf16.msra.mxu1 %v2546_v26  ;;  %v549_v11 = vsub.f32 %v541_v49, %v545_v8 }
 0x1ee   : > { %v1928_v27 = vpop.trf.xlu0 }
 0x1f6   : > { %v1929_v28 = vpop.trf.xlu0 }
 0x1f7   : > { %1763 = vmatmul.msk.bf16.vlgmr.msra.gmra.mxu3 %vm589_vm0, %v1929_v28  ;;  %1767 = vmatmul.msk.bf16.vlgmr.msra.gmra.mxu2 %vm589_vm0, %v1922_v3  ;;  %v546_v3 = vmul.f32 0.322, %v2497_v56 }
 0x1f8   : > { %1769 = vmatmul.msk.bf16.vlgmr.msrb.gmra.mxu1 %vm589_vm0, %v1926_v21  ;;  %1201 = vmatpush.bf16.msra.mxu2 %v2455_v2 }
 0x1f9   : > { %1265 = vmatpush.bf16.msrb.mxu1 %v2455_v2  ;;  %997 = vmatpush.bf16.msra.mxu3 %v1815_v16  ;;  %v460_v2 = vmul.f32 0.523, %v2416_v20  ;;  %v467_v20 = vmul.f32 0.312, %v2420_v24  ;;  %v550_v13 = vsub.f32 %v542_v1, %v546_v3 }
 0x1fb   : > { %v464_v19 = vsub.f32 %v456_v32, %v460_v2  ;;  %v471_v43 = vadd.f32 %v467_v20, %v463_v37  ;;  %v1252_v16 = vpack.c.bf16 %v550_v13, %v549_v11 }
 0x1fc   : > { %1202 = vmatpush.bf16.msra.mxu2 %v2472_v12 }
 0x1fd   : > { %998 = vmatpush.bf16.msra.mxu3 %v1814_v17  ;;  %1266 = vmatpush.bf16.msrb.mxu1 %v2472_v12  ;;  %v532_v12 = vmul.f32 0.596, %v2433_v41  ;;  %v543_v41 = vmul.f32 0.322, %v2439_v46  ;;  %v472_v44 = vadd.f32 %v468_v40, %v464_v19  ;;  %v458_v46 = vmul.f32 0.211, %v2460_v5 }
 0x1fe   : > { %v1930_v24 = vpop.trf.xlu0  ;;  %v470_v5 = vmul.f32 0.312, %v2468_v10 }
 0x1ff   : > { %v540_v39 = vsub.f32 %v532_v12, %v536_v15  ;;  %v547_v45 = vsub.f32 %v539_v38, %v543_v41  ;;  %v1187_v48 = vpack.c.bf16 %v472_v44, %v471_v43  ;;  %v466_v62 = vsub.f32 %v458_v46, %v462_v50 }
 0x201   : > { %v548_v47 = vsub.f32 %v540_v39, %v544_v42  ;;  %v474_v54 = vadd.f32 %v470_v5, %v466_v62 }
 0x203   : > { %v1251_v57 = vpack.c.bf16 %v548_v47, %v547_v45 }
 0x207   : > { %1768 = vmatmul.msk.bf16.vlgmr.msrb.gmra.mxu3 %vm589_vm0, %v1924_v14  ;;  %1770 = vmatmul.msk.bf16.vlgmr.msrb.gmra.mxu2 %vm589_vm0, %v1928_v27  ;;  %v1188_v14 = vpack.c.bf16 %v474_v54, %v473_v53 }
 0x208   : > { %1790 = vmatmul.msk.bf16.vlgmr.msra.gmra.mxu1 %vm589_vm0, %v1144_v30  ;;  %1241 = vmatpush.bf16.msrb.mxu3 %v2541_v22 }
 0x209   : > { %1369 = vmatpush.bf16.msrb.mxu2 %v2541_v22 }
 0x20c   : > { %1242 = vmatpush.bf16.msrb.mxu3 %v2546_v26 }
 0x20d   : > { %1370 = vmatpush.bf16.msrb.mxu2 %v2546_v26 }
 0x217   : > { %1771 = vmatmul.msk.bf16.vlgmr.msra.gmra.mxu3 %vm589_vm0, %v1930_v24  ;;  %1791 = vmatmul.msk.bf16.vlgmr.msra.gmra.mxu2 %vm589_vm0, %v1187_v48 }
 0x218   : > { %1794 = vmatmul.msk.bf16.vlgmr.msrb.gmra.mxu1 %vm589_vm0, %v1251_v57  ;;  %1305 = vmatpush.bf16.msra.mxu3 %v2541_v22 }
 0x21c   : > { %1306 = vmatpush.bf16.msra.mxu3 %v2546_v26 }
 0x224   : > { %v661_v9 = vpop.f32.mrf.mxu1 }
 0x225   : > { %v666_v30 = vand.u32 2147483647, %v661_v9 }
 0x227   : > { %1792 = vmatmul.msk.bf16.gmra.mxu2 %vm589_vm0, %v1188_v14  ;;  %v1013_v33 = vmul.f32 %v666_v30, %v666_v30  ;;  %v1007_v47 = vmul.f32 2.0, %v666_v30 }
 0x228   : > { %1795 = vmatmul.msk.bf16.gmra.mxu1 %vm589_vm0, %v1252_v16 }
 0x22c   : > { %v663_v10 = vpop.f32.mrf.mxu1 }
 0x22d   : > { %v667_v36 = vand.u32 2147483647, %v663_v10 }
 0x22f   : > { %v1014_v39 = vmul.f32 %v667_v36, %v667_v36  ;;  %v1008_v5 = vmul.f32 2.0, %v667_v36 }
 0x23a   : > { %v697_v17 = vpop.f32.mrf.mxu2 }
 0x23b   : > { %v702_v2 = vand.u32 2147483647, %v697_v17 }
 0x23d   : > { %v1031_v37 = vmul.f32 %v702_v2, %v702_v2  ;;  %v1025_v48 = vmul.f32 2.0, %v702_v2 }
 0x242   : > { %v699_v56 = vpop.f32.mrf.mxu2 }
 0x243   : > { %v703_v42 = vand.u32 2147483647, %v699_v56 }
 0x245   : > { %v1032_v50 = vmul.f32 %v703_v42, %v703_v42  ;;  %v1026_v54 = vmul.f32 2.0, %v703_v42 }
 0x24a   : > { %v2594_v22 = vpop.f32.mrf.mxu3 }
 0x252   : > { %v2596_v28 = vpop.f32.mrf.mxu3 }
 0x253   : > { %v739_v2 = vand.u32 2147483647, %v2596_v28 }
 0x254   : > { %v769_v55 = vpop.f32.mrf.mxu1 }
 0x255   : > { %v774_v57 = vand.u32 2147483647, %v769_v55 }
 0x257   : > { %v1055_v62 = vmul.f32 %v774_v57, %v774_v57 }
 0x25c   : > { %v771_v7 = vpop.f32.mrf.mxu1 }
 0x25d   : > { %v775_v11 = vand.u32 2147483647, %v771_v7 }
 0x25f   : > { %v1056_v7 = vmul.f32 %v775_v11, %v775_v11 }
 0x264   : > { %v905_v21 = vpop.f32.mrf.mxu1 }
 0x265   : > { %v910_v27 = vand.u32 2147483647, %v905_v21 }
 0x267   : > { %v1015_v31 = vmul.f32 %v910_v27, %v910_v27  ;;  %v1009_v58 = vmul.f32 %v1007_v47, %v910_v27 }
 0x269   : > { %v1017_v34 = vadd.f32 %v1015_v31, %v1013_v33  ;;  %v1011_v8 = vadd.f32 30.0, %v1009_v58  ;;  %v738_v31 = vand.u32 2147483647, %v2594_v22 }
 0x26a   : > { %v805_v23 = vpop.f32.mrf.mxu2 }
 0x26b   : > { %v1019_v19 = vadd.f32 30.0, %v1017_v34  ;;  %v810_v3 = vand.u32 2147483647, %v805_v23  ;;  %v1049_v34 = vmul.f32 2.0, %v774_v57 }
 0x26c   : > { %v907_v26 = vpop.f32.mrf.mxu1 }
 0x26d   : > { %v911_v12 = vand.u32 2147483647, %v907_v26  ;;  %1935 = vrcp.f32 %v1019_v19  ;;  %v1073_v26 = vmul.f32 %v810_v3, %v810_v3 }
 0x26f   : > { %v1016_v20 = vmul.f32 %v911_v12, %v911_v12  ;;  %v1010_v55 = vmul.f32 %v1008_v5, %v911_v12 }
 0x271   : > { %v1018_v43 = vadd.f32 %v1016_v20, %v1014_v39  ;;  %v1012_v36 = vadd.f32 30.0, %v1010_v55 }
 0x272   : > { %v2598_v29 = vpop.f32.mrf.mxu2 }
 0x273   : > { %v1020_v59 = vadd.f32 30.0, %v1018_v43  ;;  %v1936_v6 = vpop.eup %1935 }
 0x274   : > { %v1023_v13 = vmul.f32 %v1936_v6, %v1011_v8 }
 0x275   : > { %v962_v32 = vpop.f32.mrf.mxu1 }
 0x276   : > { %v967_v44 = vand.u32 2147483647, %v962_v32 }
 0x278   : > { %v1057_v60 = vmul.f32 %v967_v44, %v967_v44  ;;  %v1051_v22 = vmul.f32 %v1049_v34, %v967_v44 }
 0x27a   : > { %v2600_v35 = vpop.f32.mrf.mxu3  ;;  %v924_v15 = vpop.f32.mrf.mxu2  ;;  %v1059_v52 = vadd.f32 %v1057_v60, %v1055_v62 }
 0x27b   : > { %v929_v18 = vand.u32 2147483647, %v924_v15 }
 0x27c   : > { %v1061_v27 = vadd.f32 30.0, %v1059_v52 }
 0x27d   : > { %v1033_v40 = vmul.f32 %v929_v18, %v929_v18  ;;  %v964_v38 = vpop.f32.mrf.mxu1  ;;  %v1027_v46 = vmul.f32 %v1025_v48, %v929_v18 }
 0x27e   : > { %v2606_v49 = vand.u32 2147483647, %v964_v38  ;;  %v811_v38 = vand.u32 2147483647, %v2598_v29 }
 0x27f   : > { %v1035_v41 = vadd.f32 %v1033_v40, %v1031_v37  ;;  %v1029_v0 = vadd.f32 30.0, %v1027_v46  ;;  %v1067_v40 = vmul.f32 2.0, %v810_v3  ;;  %v1050_v3 = vmul.f32 2.0, %v775_v11 }
 0x280   : > { %v1058_v56 = vmul.f32 %v2606_v49, %v2606_v49  ;;  %v1074_v58 = vmul.f32 %v811_v38, %v811_v38  ;;  %v1068_v52 = vmul.f32 2.0, %v811_v38 }
 0x281   : > { %v1037_v45 = vadd.f32 30.0, %v1035_v41  ;;  %v1052_v55 = vmul.f32 %v1050_v3, %v2606_v49 }
 0x282   : > { %v2602_v51 = vpop.f32.mrf.mxu3  ;;  %v926_v24 = vpop.f32.mrf.mxu2  ;;  %v1060_v37 = vadd.f32 %v1058_v56, %v1056_v7 }
 0x283   : > { %1937 = vrcp.f32 %v1037_v45  ;;  %v930_v25 = vand.u32 2147483647, %v926_v24 }
 0x284   : > { %1939 = vrcp.f32 %v1020_v59  ;;  %v1062_v24 = vadd.f32 30.0, %v1060_v37 }
 0x285   : > { %v1034_v61 = vmul.f32 %v930_v25, %v930_v25  ;;  %v2604_v4 = vpop.f32.mrf.mxu1  ;;  %v1028_v21 = vmul.f32 %v1026_v54, %v930_v25 }
 0x287   : > { %v1036_v63 = vadd.f32 %v1034_v61, %v1032_v50  ;;  %v1030_v19 = vadd.f32 30.0, %v1028_v21  ;;  %v1053_v61 = vadd.f32 30.0, %v1051_v22 }
 0x289   : > { %v1938_v1 = vpop.eup %1937  ;;  %v1038_v53 = vadd.f32 30.0, %v1036_v63 }
 0x28a   : > { %v1041_v14 = vmul.f32 %v1938_v1, %v1029_v0  ;;  %v943_v16 = vpop.f32.mrf.mxu3  ;;  %v981_v9 = vpop.f32.mrf.mxu2 }
 0x28b   : > { %1941 = vrcp.f32 %v1038_v53  ;;  %v986_v10 = vand.u32 2147483647, %v981_v9  ;;  %v1940_v33 = vpop.eup %1939  ;;  %v948_v15 = vand.u32 2147483647, %v943_v16 }
 0x28c   : > { %v1043_v17 = vadd.f32 %v1041_v14, %v1023_v13  ;;  %1943 = vrcp.f32 %v1061_v27  ;;  %v1024_v41 = vmul.f32 %v1940_v33, %v1012_v36 }
 0x28d   : > { %v1075_v23 = vmul.f32 %v986_v10, %v986_v10  ;;  %v2610_v30 = vpop.f32.mrf.mxu1  ;;  %v1047_v28 = vmax.f32 %v738_v31, %v948_v15  ;;  %v1069_v25 = vmul.f32 %v1067_v40, %v986_v10  ;;  %v846_v10 = vand.u32 2147483647, %v2600_v35 }
 0x28e   : > { %v1045_v32 = vmul.f32 0.5, %v1043_v17  ;;  %v1054_v31 = vadd.f32 30.0, %v1052_v55 }
 0x28f   : > { %v1077_v12 = vadd.f32 %v1075_v23, %v1073_v26  ;;  %v1446_v6 = vsel %vm1433_vm1, %v1047_v28, 0.0  ;;  %v1071_v8 = vadd.f32 30.0, %v1069_v25 }
 0x290   : > { %v1423_v18 = vmul.f32 2.1, %v1045_v32 }
 0x291   : > { %v1942_v20 = vpop.eup %1941  ;;  %v1079_v39 = vadd.f32 30.0, %v1077_v12  ;;  %v847_v12 = vand.u32 2147483647, %v2602_v51 }
 0x292   : > { %1945 = vtanh.f32 %v1423_v18  ;;  %v1042_v42 = vmul.f32 %v1942_v20, %v1030_v19  ;;  %v945_v43 = vpop.f32.mrf.mxu3  ;;  %v983_v45 = vpop.f32.mrf.mxu2 }
 0x293   : > { %1947 = vrcp.f32 %v1079_v39  ;;  %v949_v47 = vand.u32 2147483647, %v945_v43  ;;  %v987_v48 = vand.u32 2147483647, %v983_v45  ;;  %v1944_v60 = vpop.eup %1943 }
 0x294   : > { %v1044_v57 = vadd.f32 %v1042_v42, %v1024_v41  ;;  %1949 = vrcp.f32 %v1062_v24  ;;  %v1065_v54 = vmul.f32 %v1944_v60, %v1053_v61 }
 0x295   : > { %v1048_v46 = vmax.f32 %v739_v2, %v949_v47  ;;  %v1076_v50 = vmul.f32 %v987_v48, %v987_v48  ;;  %v1268_v29 = vpop.f32.mrf.mxu1  ;;  %v1070_v21 = vmul.f32 %v1068_v52, %v987_v48 }
 0x296   : > { %v1046_v59 = vmul.f32 0.5, %v1044_v57 }
 0x297   : > { %v1078_v44 = vadd.f32 %v1076_v50, %v1074_v58  ;;  %v1447_v62 = vsel %vm1433_vm1, %v1048_v46, 0.0  ;;  %v1072_v2 = vadd.f32 30.0, %v1070_v21 }
 0x298   : > { %v1946_v63 = vpop.eup %1945  ;;  %v1424_v5 = vmul.f32 2.1, %v1046_v59  ;;  %v1448_v0 = vadd.f32 %v1447_v62, %v1446_v6 }
 0x299   : > { %v1948_v1 = vpop.eup %1947  ;;  %v1080_v53 = vadd.f32 30.0, %v1078_v44  ;;  %v1427_v9 = vadd.f32 1.0, %v1946_v63 }
 0x29a   : > { %1951 = vtanh.f32 %v1424_v5  ;;  %v1083_v13 = vmul.f32 %v1948_v1, %v1071_v8  ;;  %v1204_v14 = vpop.f32.mrf.mxu2  ;;  %1449 = vadd.xlane.f32.xlu1 %v1448_v0  ;;  %v1000_v16 = vpop.f32.mrf.mxu3 }
 0x29b   : > { %1953 = vrcp.f32 %v1080_v53  ;;  %v1005_v17 = vand.u32 2147483647, %v1000_v16  ;;  %v1950_v27 = vpop.eup %1949  ;;  %v1429_v23 = vmul.f32 0.5, %v1427_v9 }
 0x29c   : > { %v1085_v56 = vadd.f32 %v1083_v13, %v1065_v54  ;;  %v1066_v15 = vmul.f32 %v1950_v27, %v1054_v31  ;;  %v1352_v13 = vpop.trf.xlu0 }
 0x29d   : > { %v1270_v26 = vpop.f32.mrf.mxu1  ;;  %v1089_v7 = vmax.f32 %v846_v10, %v1005_v17  ;;  %v1431_v19 = vmul.f32 %v1429_v23, %v1047_v28  ;;  %1799 = vmatmul.msk.bf16.vlgmr.msrb.gmra.mxu2 %vm589_vm0, %v1352_v13 }
 0x29e   : > { %v1087_v11 = vmul.f32 0.5, %v1085_v56  ;;  %v1278_v36 = vpack.c.bf16 %v1270_v26, %v1268_v29 }
 0x29f   : > { %v1419_v39 = vadd.f32 %v1089_v7, %v1047_v28  ;;  %v1434_v47 = vsel %vm1433_vm1, %v1431_v19, 0.0 }
 0x2a0   : > { %v1952_v32 = vpop.eup %1951  ;;  %v1458_v33 = vmul.f32 2.1, %v1087_v11 }
 0x2a1   : > { %v1954_v34 = vpop.eup %1953  ;;  %v1428_v35 = vadd.f32 1.0, %v1952_v32  ;;  %v2622_v24 = vmul.f32 0.5, %v1419_v39 }
 0x2a2   : > { %1955 = vtanh.f32 %v1458_v33  ;;  %v1084_v49 = vmul.f32 %v1954_v34, %v1072_v2  ;;  %v1002_v18 = vpop.f32.mrf.mxu3  ;;  %v1206_v37 = vpop.f32.mrf.mxu2 }
 0x2a3   : > { %v1006_v20 = vand.u32 2147483647, %v1002_v18  ;;  %v1214_v40 = vpack.c.bf16 %v1206_v37, %v1204_v14  ;;  %v1430_v38 = vmul.f32 0.5, %v1428_v35  ;;  %v1514_v29 = vsel %vm1433_vm1, %v2622_v24, 0.0 }
 0x2a4   : > { %v1086_v41 = vadd.f32 %v1084_v49, %v1066_v15  ;;  %v1480_v14 = vsel %vm1433_vm1, %v1089_v7, 0.0 }
 0x2a5   : > { %v1090_v22 = vmax.f32 %v847_v12, %v1006_v20  ;;  %1931 = vxpose.binary.xlu2.c.b16.start [1/4] (short) (narrow) %v1278_v36, %v1214_v40, 16  ;;  %v1432_v42 = vmul.f32 %v1430_v38, %v1048_v46  ;;  %v1273_v45 = vpop.f32.mrf.mxu1  ;;  %v1186_v20 = vand.u32 2147483647, %v2610_v30 }
 0x2a6   : > { %v1088_v43 = vmul.f32 0.5, %v1086_v41 }
 0x2a7   : > { %v1435_v51 = vsel %vm1433_vm1, %v1432_v42, 0.0  ;;  %v1420_v48 = vadd.f32 %v1090_v22, %v1048_v46  ;;  %v1481_v16 = vsel %vm1433_vm1, %v1090_v22, 0.0 }
 0x2a8   : > { %v1956_v57 = vpop.eup %1955  ;;  %v1459_v25 = vmul.f32 2.1, %v1088_v43  ;;  %v1436_v58 = vadd.f32 %v1435_v51, %v1434_v47  ;;  %v1482_v9 = vadd.f32 %v1481_v16, %v1480_v14  ;;  %v1386_v43 = vmul.f32 %v1186_v20, %v1186_v20 }
 0x2a9   : > { %v2624_v50 = vmul.f32 0.5, %v1420_v48  ;;  %v1462_v60 = vadd.f32 1.0, %v1956_v57 }
 0x2aa   : > { %1957 = vtanh.f32 %v1459_v25  ;;  %v1209_v28 = vpop.f32.mrf.mxu2  ;;  %1437 = vadd.xlane.f32.xlu1 %v1436_v58 }
 0x2ab   : > { %v1515_v59 = vsel %vm1433_vm1, %v2624_v50, 0.0  ;;  %v1464_v46 = vmul.f32 0.5, %v1462_v60 }
 0x2ac   : > { %v1516_v61 = vadd.f32 %v1515_v59, %v1514_v29  ;;  %v1380_v29 = vmul.f32 2.0, %v1186_v20 }
 0x2ad   : > { %v1275_v6 = vpop.f32.mrf.mxu1  ;;  %v1466_v1 = vmul.f32 %v1464_v46, %v1089_v7  ;;  %v1185_v7 = vand.u32 2147483647, %v2604_v4 }
 0x2ae   : > { %1517 = vadd.xlane.f32.xlu0 %v1516_v61  ;;  %v1279_v5 = vpack.c.bf16 %v1275_v6, %v1273_v45 }
 0x2af   : > { %v1468_v52 = vsel %vm1433_vm1, %v1466_v1, 0.0  ;;  %v1385_v12 = vmul.f32 %v1185_v7, %v1185_v7  ;;  %v1379_v39 = vmul.f32 2.0, %v1185_v7 }
 0x2b0   : > { %v1958_v44 = vpop.eup %1957 }
 0x2b1   : > { %v1463_v62 = vadd.f32 1.0, %v1958_v44 }
 0x2b2   : > { %v1211_v63 = vpop.f32.mrf.mxu2 }
 0x2b3   : > { %v1215_v8 = vpack.c.bf16 %v1211_v63, %v1209_v28  ;;  %v1465_v0 = vmul.f32 0.5, %v1463_v62 }
 0x2b5   : > { %1932 = vxpose.binary.xlu2.c.b16.end [2/4] (short) (narrow) %v1279_v5, %v1215_v8, 16  ;;  %v1467_v3 = vmul.f32 %v1465_v0, %v1090_v22 }
 0x2b7   : > { %v1469_v53 = vsel %vm1433_vm1, %v1467_v3, 0.0 }
 0x2b8   : > { %v1470_v54 = vadd.f32 %v1469_v53, %v1468_v52 }
 0x2ba   : > { %1471 = vadd.xlane.f32.xlu1 %v1470_v54 }
 0x320   : > { %v1372_v56 = vpop.f32.mrf.mxu2 }
 0x321   : > { %v1377_v26 = vand.u32 2147483647, %v1372_v56 }
 0x323   : > { %v1405_v23 = vmul.f32 %v1377_v26, %v1377_v26 }
 0x326   : > { %1483 = vadd.xlane.f32.xlu2 %v1482_v9 }
 0x328   : > { %v1374_v31 = vpop.f32.mrf.mxu2 }
 0x329   : > { %v1378_v2 = vand.u32 2147483647, %v1374_v31 }
 0x32b   : > { %v1406_v36 = vmul.f32 %v1378_v2, %v1378_v2 }
 0x346   : > { %v1933_v10 = vpop.trf.xlu2 }
 0x347   : > { %1793 = vmatmul.msk.bf16.vlgmr.msrb.gmra.mxu3 %vm589_vm0, %v1933_v10 }
 0x34e   : > { %v1934_v55 = vpop.trf.xlu2 }
 0x357   : > { %1796 = vmatmul.msk.bf16.vlgmr.msra.gmra.mxu3 %vm589_vm0, %v1934_v55 }
 0x3ca   : > { %v1244_v17 = vpop.f32.mrf.mxu3 }
 0x3cb   : > { %v1249_v21 = vand.u32 2147483647, %v1244_v17 }
 0x3cd   : > { %v1403_v11 = vmul.f32 %v1249_v21, %v1249_v21  ;;  %v1397_v19 = vmul.f32 2.0, %v1249_v21 }
 0x3cf   : > { %v1407_v32 = vadd.f32 %v1405_v23, %v1403_v11  ;;  %v1399_v22 = vmul.f32 %v1397_v19, %v1377_v26  ;;  %v1484_v11 = vpop.xlane.xlu2 %1483  ;;  %v1450_v23 = vpop.xlane.xlu1 %1449 }
 0x3d0   : > { %v1485_v31 = vrot.slane %v1484_v11, 4  ;;  %v1451_v7 = vrot.slane %v1450_v23, 4 }
 0x3d1   : > { %v1409_v35 = vadd.f32 30.0, %v1407_v32  ;;  %v1401_v57 = vadd.f32 30.0, %v1399_v22  ;;  %v1518_v32 = vpop.xlane.xlu0 %1517 }
 0x3d2   : > { %v1246_v27 = vpop.f32.mrf.mxu3 }
 0x3d3   : > { %v1250_v33 = vand.u32 2147483647, %v1246_v27  ;;  %1959 = vrcp.f32 %v1409_v35 }
 0x3d5   : > { %v1404_v49 = vmul.f32 %v1250_v33, %v1250_v33  ;;  %v1398_v25 = vmul.f32 2.0, %v1250_v33  ;;  %v1486_v33 = vadd.f32 %v1485_v31, %v1484_v11 }
 0x3d7   : > { %v1408_v40 = vadd.f32 %v1406_v36, %v1404_v49  ;;  %v1400_v61 = vmul.f32 %v1398_v25, %v1378_v2  ;;  %v1452_v2 = vadd.f32 %v1451_v7, %v1450_v23 }
 0x3d9   : > { %v1410_v45 = vadd.f32 30.0, %v1408_v40  ;;  %v1960_v51 = vpop.eup %1959  ;;  %v1402_v63 = vadd.f32 30.0, %v1400_v61 }
 0x3da   : > { %v1308_v34 = vpop.f32.mrf.mxu3  ;;  %v1413_v59 = vmul.f32 %v1960_v51, %v1401_v57 }
 0x3db   : > { %v1313_v15 = vand.u32 2147483647, %v1308_v34  ;;  %v1519_v34 = vrot.slane %v1518_v32, 4 }
 0x3dd   : > { %v1387_v18 = vmul.f32 %v1313_v15, %v1313_v15  ;;  %v1381_v42 = vmul.f32 %v1379_v39, %v1313_v15  ;;  %v1487_v15 = vrot.slane %v1486_v33, 2  ;;  %v1520_v35 = vadd.f32 %v1519_v34, %v1518_v32  ;;  %v1438_v39 = vpop.xlane.xlu1 %1437 }
 0x3df   : > { %v1389_v37 = vadd.f32 %v1387_v18, %v1385_v12  ;;  %v1383_v58 = vadd.f32 30.0, %v1381_v42  ;;  %v1453_v12 = vrot.slane %v1452_v2, 2 }
 0x3e1   : > { %v1391_v38 = vadd.f32 30.0, %v1389_v37  ;;  %v1454_v49 = vadd.f32 %v1453_v12, %v1452_v2 }
 0x3e2   : > { %v1310_v41 = vpop.f32.mrf.mxu3 }
 0x3e3   : > { %1961 = vrcp.f32 %v1391_v38  ;;  %v1314_v4 = vand.u32 2147483647, %v1310_v41  ;;  %v1455_v18 = vrot.slane %v1454_v49, 1 }
 0x3e4   : > { %1963 = vrcp.f32 %v1410_v45  ;;  %v1439_v45 = vrot.slane %v1438_v39, 4 }
 0x3e5   : > { %v1388_v47 = vmul.f32 %v1314_v4, %v1314_v4  ;;  %v1382_v44 = vmul.f32 %v1380_v29, %v1314_v4  ;;  %v1456_v20 = vadd.f32 %v1455_v18, %v1454_v49  ;;  %v1472_v42 = vpop.xlane.xlu1 %1471 }
 0x3e7   : > { %v1390_v48 = vadd.f32 %v1388_v47, %v1386_v43  ;;  %v1384_v8 = vadd.f32 30.0, %v1382_v44  ;;  %v1473_v43 = vrot.slane %v1472_v42, 4 }
 0x3e9   : > { %v1962_v28 = vpop.eup %1961  ;;  %v1392_v30 = vadd.f32 30.0, %v1390_v48  ;;  %v1474_v47 = vadd.f32 %v1473_v43, %v1472_v42  ;;  %v1440_v48 = vadd.f32 %v1439_v45, %v1438_v39 }
 0x3ea   : > { %v1395_v60 = vmul.f32 %v1962_v28, %v1383_v58  ;;  %v1964_v62 = vpop.eup %1963 }
 0x3eb   : > { %1965 = vrcp.f32 %v1392_v30  ;;  %v1414_v1 = vmul.f32 %v1964_v62, %v1402_v63  ;;  %v1475_v57 = vrot.slane %v1474_v47, 2  ;;  %v1441_v58 = vrot.slane %v1440_v48, 2 }
 0x3ec   : > { %v1415_v46 = vadd.f32 %v1413_v59, %v1395_v60 }
 0x3ed   : > { %v1476_v28 = vadd.f32 %v1475_v57, %v1474_v47  ;;  %v1442_v59 = vadd.f32 %v1441_v58, %v1440_v48 }
 0x3ee   : > { %v1417_v6 = vmul.f32 0.5, %v1415_v46 }
 0x3ef   : > { %v1477_v61 = vrot.slane %v1476_v28, 1 }
 0x3f0   : > { %v1492_v5 = vmul.f32 2.1, %v1417_v6  ;;  %v1443_v6 = vrot.slane %v1442_v59, 1 }
 0x3f1   : > { %v1966_v0 = vpop.eup %1965  ;;  %v1478_v63 = vadd.f32 %v1477_v61, %v1476_v28 }
 0x3f2   : > { %1967 = vtanh.f32 %v1492_v5  ;;  %v1396_v3 = vmul.f32 %v1966_v0, %v1384_v8 }
 0x3f4   : > { %v1416_v52 = vadd.f32 %v1414_v1, %v1396_v3  ;;  %v1444_v1 = vadd.f32 %v1443_v6, %v1442_v59 }
 0x3f6   : > { %v1418_v53 = vmul.f32 0.5, %v1416_v52 }
 0x3f8   : > { %v1968_v54 = vpop.eup %1967  ;;  %v1493_v13 = vmul.f32 2.1, %v1418_v53  ;;  %v1479_v53 = vadd.f32 %v1478_v63, %v1444_v1 }
 0x3f9   : > { %v1496_v14 = vadd.f32 1.0, %v1968_v54 }
 0x3fa   : > { %1969 = vtanh.f32 %v1493_v13 }
 0x3fb   : > { %v1498_v16 = vmul.f32 0.5, %v1496_v14 }
 0x3fd   : > { %v1500_v17 = vmul.f32 %v1498_v16, %v2622_v24  ;;  %v1488_v24 = vadd.f32 %v1487_v15, %v1486_v33 }
 0x3ff   : > { %v1502_v21 = vsel %vm1433_vm1, %v1500_v17, 0.0  ;;  %v1489_v36 = vrot.slane %v1488_v24, 1 }
 0x400   : > { %v1970_v9 = vpop.eup %1969 }
 0x401   : > { %v1497_v10 = vadd.f32 1.0, %v1970_v9  ;;  %v1490_v19 = vadd.f32 %v1489_v36, %v1488_v24 }
 0x403   : > { %v1499_v55 = vmul.f32 0.5, %v1497_v10  ;;  %v1491_v38 = vadd.f32 %v1490_v19, %v1456_v20 }
 0x405   : > { %v1501_v56 = vmul.f32 %v1499_v55, %v2624_v50  ;;  %v1521_v50 = vrot.slane %v1520_v35, 2 }
 0x407   : > { %v1503_v26 = vsel %vm1433_vm1, %v1501_v56, 0.0  ;;  %v1522_v37 = vadd.f32 %v1521_v50, %v1520_v35 }
 0x408   : > { %v1504_v27 = vadd.f32 %v1503_v26, %v1502_v21 }
 0x409   : > { %v1523_v40 = vrot.slane %v1522_v37, 1 }
 0x40a   : > { %1505 = vadd.xlane.f32.xlu1 %v1504_v27 }
 0x40b   : > { %v1524_v41 = vadd.f32 %v1523_v40, %v1522_v37 }
 0x40d   : > { %v1525_v4 = vadd.f32 %v1524_v41, %v1491_v38 }
 0x40f   : > { %v1526_v22 = vmax.f32 %v1525_v4, 1e-12 }
 0x411   : > { %1971 = vrcp.f32 %v1526_v22  ;;  %v1538_v0 = vand.u32 2147483648, %v1526_v22  ;;  %vm1532_vm3 = vweird.f32 %v1526_v22  ;;  %v1536_v52 = vand.u32 2147483647, %v1526_v22 }
 0x413   : > { %v1539_v14 = vor.u32 1.1754944e-38, %v1538_v0  ;;  %vm1537_vm5 = vcmp.eq.f32.partialorder %v1536_v52, 8.507059e+37 }
 0x417   : > { %v1972_v51 = vpop.eup %1971 }
 0x418   : > { %v1528_v25 = vmul.f32 %v1972_v51, %v1526_v22  ;;  %vm1533_vm2 = vweird.f32 %v1972_v51 }
 0x419   : > { %vm1534_vm4 = vmor %vm1532_vm3, %vm1533_vm2 }
 0x41a   : > { %v1529_v30 = vsub.f32 1.0, %v1528_v25 }
 0x41c   : > { %v1530_v44 = vmul.f32 %v1972_v51, %v1529_v30 }
 0x41e   : > { %v1531_v8 = vadd.f32 %v1972_v51, %v1530_v44 }
 0x420   : > { %v1535_v13 = vsel %vm1534_vm4, %v1972_v51, %v1531_v8 }
 0x421   : > { %v1540_v9 = vsel %vm1537_vm5, %v1539_v14, %v1535_v13 }
 0x47d   : > { %v1506_v29 = vpop.xlane.xlu1 %1505 }
 0x47e   : > { %v1507_v60 = vrot.slane %v1506_v29, 4 }
 0x480   : > { %v1508_v46 = vadd.f32 %v1507_v60, %v1506_v29 }
 0x482   : > { %v1509_v62 = vrot.slane %v1508_v46, 2 }
 0x484   : > { %v1510_v5 = vadd.f32 %v1509_v62, %v1508_v46 }
 0x486   : > { %v1511_v3 = vrot.slane %v1510_v5, 1 }
 0x488   : > { %v1512_v54 = vadd.f32 %v1511_v3, %v1510_v5 }
 0x48a   : > { %v1513_v16 = vadd.f32 %v1512_v54, %v1479_v53 }
 0x48c   : > { %v1541_v10 = vmul.f32 %v1540_v9, %v1513_v16 }
 0x48e   : > { %v1542_v55 = vmax.f32 %v1541_v10, 1e-06 }
 0x490   : > { %v1543_v17 = vmin.f32 %v1542_v55, 0.999999 }
 0x492   : > { %v1544_v56 = vsub.f32 1.0, %v1543_v17 }
 0x494   : > { %1973 = vrcp.f32 %v1544_v56  ;;  %v1556_v11 = vand.u32 2147483648, %v1544_v56  ;;  %v1554_v31 = vand.u32 2147483647, %v1544_v56  ;;  %vm1550_vm7 = vweird.f32 %v1544_v56 }
 0x496   : > { %v1557_v32 = vor.u32 1.1754944e-38, %v1556_v11  ;;  %vm1555_vm9 = vcmp.eq.f32.partialorder %v1554_v31, 8.507059e+37 }
 0x49a   : > { %v1974_v21 = vpop.eup %1973 }
 0x49b   : > { %v1546_v26 = vmul.f32 %v1974_v21, %v1544_v56  ;;  %vm1551_vm6 = vweird.f32 %v1974_v21 }
 0x49c   : > { %vm1552_vm8 = vmor %vm1550_vm7, %vm1551_vm6 }
 0x49d   : > { %v1547_v27 = vsub.f32 1.0, %v1546_v26 }
 0x49f   : > { %v1548_v23 = vmul.f32 %v1974_v21, %v1547_v27 }
 0x4a1   : > { %v1549_v7 = vadd.f32 %v1974_v21, %v1548_v23 }
 0x4a3   : > { %v1553_v33 = vsel %vm1552_vm8, %v1974_v21, %v1549_v7 }
 0x4a4   : > { %v1558_v2 = vsel %vm1555_vm9, %v1557_v32, %v1553_v33 }
 0x4a5   : > { %v1559_v34 = vmul.f32 %v1558_v2, %v1543_v17 }
 0x4a7   : > { %1975 = vlog2.f32 %v1559_v34 }
 0x4ad   : > { %v1976_v15 = vpop.eup %1975 }
 0x4ae   : > { %v1561_v12 = vmul.f32 0.6931472, %v1976_v15 }
 0x4b0   : > { %v1562_v35 = vmul.f32 0.23809524, %v1561_v12 }
 0x4b2   : > { %v1563_v24 = vmul.f32 %v1562_v35, %v1562_v35 }
 0x4b4   : > { %1565 = vst.msk [vmem:[%s377_s15] sm:$0x1] %vm1564_vm10, %v1563_v24 }
 0x4b5 PF: > { %p21_p4 = scmp.ge.s32.totalorder %s2316_s10, 4   ;;  %s2676_s21 = smov %s2199_s22 }
 0x4b6   : > { %s2677_s22 = smov %s2203_s23  ;;  %s2678_s23 = smov %s2327_s16 }
 0x4b7   : > { %s2679_s24 = smov %s2316_s10  ;;  %23 = sbr.rel (!%p21_p4) target bundleno = 10 (0xa), region = 118 }
 0x4bc   :  { %1583 = vsyncpa [#allocation3], 1 }
 0x4bd   :  { %1585 = vsyncpa [#allocation3 + $0x1], 1 }
 0x4be   :  { %1586 = vsyncpa [#allocation5], 1 }
 0x4bf   :  { %1588 = vsyncpa [#allocation5 + $0x1], 1 }
 0x4c0   :  { %1589 = vsyncpa [#allocation8], 1 }
 0x4c1   :  { %1590 = vsyncpa [#allocation11], 1 }

</bundles_post_ra>
